<compile_context>
chip_gen: v5e
topology: v5e:2x2
jax: 0.10.0
libtpu: 0.0.40
codegen_flags: <defaults>
</compile_context>

<pallas_src>
import jax
import jax.numpy as jnp
from jax.experimental import pallas as pl
from jax.experimental.pallas import tpu as pltpu

IN = 784                            # flattened input features
H1, H2, OUT = 300, 100, 10          # logical (PyTorch) feature dims
H1P, H2P, OUTP = 384, 128, 128      # lane-padded feature dims (multiples of 128)
_NEG_BIG = -1.0e30                  # bias for fake logit columns (vanishes under exp)


def _round_up(n, m):
    return ((n + m - 1) // m) * m


def _pad_axis(a, axis, target, value=0.0):
    pad = target - a.shape[axis]
    if pad == 0:
        return a
    widths = [(0, 0)] * a.ndim
    widths[axis] = (0, pad)
    return jnp.pad(a, widths, constant_values=value)


def _mlp_kernel(x_ref, w1_ref, b1_ref, w2_ref, b2_ref, w3_ref, b3_ref, out_ref):
    x = x_ref[...]                                                      # (TB, 784)

    # l1 + ReLU  (MXU accumulates in f32; elementwise path stays f32)
    h1 = jnp.dot(x, w1_ref[...], preferred_element_type=jnp.float32) + b1_ref[...]
    h1 = jnp.maximum(h1, 0.0)                                           # (TB, 384)

    # l2 + ReLU
    h2 = jnp.dot(h1.astype(w2_ref.dtype), w2_ref[...],
                 preferred_element_type=jnp.float32) + b2_ref[...]
    h2 = jnp.maximum(h2, 0.0)                                           # (TB, 128)

    # l3 — padded logit columns carry bias -1e30, so exp() underflows to 0
    logits = jnp.dot(h2.astype(w3_ref.dtype), w3_ref[...],
                     preferred_element_type=jnp.float32) + b3_ref[...]  # (TB, 128)

    # numerically stable log_softmax along the lane axis (XLU reduce + EUP exp/log)
    m = jnp.max(logits, axis=-1, keepdims=True)
    shifted = logits - m
    lse = jnp.log(jnp.sum(jnp.exp(shifted), axis=-1, keepdims=True))
    out_ref[...] = (shifted - lse).astype(out_ref.dtype)


def _pad_params(params, mxu_dtype):
    """Pad PyTorch-shaped (in, out) weights / (1, out) biases to lane multiples."""
    w1, b1, w2, b2, w3, b3 = params
    b1 = jnp.reshape(b1, (1, -1)).astype(jnp.float32)
    b2 = jnp.reshape(b2, (1, -1)).astype(jnp.float32)
    b3 = jnp.reshape(b3, (1, -1)).astype(jnp.float32)

    w1p = _pad_axis(w1.astype(jnp.float32), 1, H1P).astype(mxu_dtype)                      # (784, 384)
    b1p = _pad_axis(b1, 1, H1P)                                                            # (1, 384)
    w2p = _pad_axis(_pad_axis(w2.astype(jnp.float32), 0, H1P), 1, H2P).astype(mxu_dtype)   # (384, 128)
    b2p = _pad_axis(b2, 1, H2P)                                                            # (1, 128)
    w3p = _pad_axis(_pad_axis(w3.astype(jnp.float32), 0, H2P), 1, OUTP).astype(mxu_dtype)  # (128, 128)
    b3p = _pad_axis(b3, 1, OUTP, value=_NEG_BIG)                                           # (1, 128)
    return w1p, b1p, w2p, b2p, w3p, b3p


def _resident_spec(shape):
    """VMEM-resident operand: constant index_map, single pipeline buffer."""
    try:
        return pl.BlockSpec(shape, lambda i: (0, 0),
                            pipeline_mode=pl.Buffered(buffer_count=1))
    except TypeError:   # older pallas without pipeline_mode — fall back to default buffering
        return pl.BlockSpec(shape, lambda i: (0, 0))


def simple_nn_forward(x, params, *, block_b=2048, mxu_dtype=jnp.bfloat16,
                      out_dtype=jnp.float32, min_grid=2):
    """Forward pass of SimpleNN.  x: any shape whose trailing dims flatten to 784.

    Note: with the default mxu_dtype=bfloat16 the log-probs match the f32 PyTorch
    reference to ~1e-2 (matmul operands are rounded to bf16; accumulation is f32).
    Pass mxu_dtype=jnp.float32 for near-exact results.
    """
    w1, b1, w2, b2, w3, b3 = _pad_params(params, mxu_dtype)

    x2d = jnp.reshape(x, (-1, IN)).astype(mxu_dtype)     # same as torch x.view(-1, 784)
    batch = x2d.shape[0]

    # dtype-aware sublane granule: bf16 packs (16,128) per vreg, f32 packs (8,128)
    x_item = jnp.dtype(mxu_dtype).itemsize
    out_item = jnp.dtype(out_dtype).itemsize
    sublane = 16 if min(x_item, out_item) == 2 else 8

    # Balanced tiling: choose the tile COUNT first (>= min_grid when the batch allows,
    # so the "parallel" batch axis can use both v7x TensorCores), then size tb so the
    # last-tile padding waste is capped instead of padding batch up to a fixed tb.
    num_tiles = pl.cdiv(batch, int(block_b))
    if batch > sublane:
        num_tiles = max(num_tiles, int(min_grid))
    tb = _round_up(pl.cdiv(batch, num_tiles), sublane)
    batch_p = _round_up(batch, tb)
    if batch_p != batch:
        x2d = jnp.pad(x2d, ((0, batch_p - batch), (0, 0)))
    grid = (batch_p // tb,)

    # VMEM budget: 2x x-buffers + 2x out-buffers + single-buffered weights/biases
    # + fused f32 temporaries (h1, h2, logits).  Cap at 48 MiB — safe on every
    # generation (v7x has 64 MiB/TC; v5e/v6e have 128 MiB physical).
    w_bytes = ((w1.size + w2.size + w3.size) * x_item
               + (b1.size + b2.size + b3.size) * 4)
    vmem_needed = (2 * tb * IN * x_item
                   + 2 * tb * OUTP * out_item
                   + w_bytes
                   + tb * (H1P + H2P + OUTP) * 4)
    vmem_limit = min(48 * 1024 * 1024,
                     max(32 * 1024 * 1024, int(vmem_needed * 5 // 4)))

    flops = 2 * batch_p * (IN * H1P + H1P * H2P + H2P * OUTP)
    bytes_accessed = (batch_p * IN * x_item          # x stream (dominant)
                      + batch_p * OUTP * out_item    # output stream
                      + w_bytes)                     # weights, read once

    out = pl.pallas_call(
        _mlp_kernel,
        out_shape=jax.ShapeDtypeStruct((batch_p, OUTP), out_dtype),
        grid=grid,
        in_specs=[
            pl.BlockSpec((tb, IN), lambda i: (i, 0)),   # x: streamed, double-buffered
            _resident_spec((IN, H1P)),                  # weights/biases: VMEM-resident,
            _resident_spec((1, H1P)),                   # single buffer, never re-DMA'd
            _resident_spec((H1P, H2P)),
            _resident_spec((1, H2P)),
            _resident_spec((H2P, OUTP)),
            _resident_spec((1, OUTP)),
        ],
        out_specs=pl.BlockSpec((tb, OUTP), lambda i: (i, 0)),
        compiler_params=pltpu.CompilerParams(
            dimension_semantics=("parallel",),          # megacore-shard batch on v7x
            vmem_limit_bytes=int(vmem_limit),
        ),
        cost_estimate=pl.CostEstimate(
            flops=int(flops),
            transcendentals=int(batch_p * OUTP),
            bytes_accessed=int(bytes_accessed),
        ),
    )(x2d, w1, b1, w2, b2, w3, b3)

    return out[:batch, :OUT].astype(jnp.float32)


def init_params(key):
    """Deterministic init matching the nn.Linear shapes of SimpleNN(784)."""
    def linear(key, fan_in, fan_out):
        kw, kb = jax.random.split(key)
        bound = 1.0 / jnp.sqrt(jnp.float32(fan_in))      # PyTorch default Linear bound
        w = jax.random.uniform(kw, (fan_in, fan_out), jnp.float32, -bound, bound)
        b = jax.random.uniform(kb, (1, fan_out), jnp.float32, -bound, bound)
        return w, b

    k1, k2, k3 = jax.random.split(key, 3)
    w1, b1 = linear(k1, IN, H1)
    w2, b2 = linear(k2, H1, H2)
    w3, b3 = linear(k3, H2, OUT)
    return (w1, b1, w2, b2, w3, b3)


def _ref_forward(x, params):
    """Pure-JAX reference (mirrors the PyTorch module)."""
    w1, b1, w2, b2, w3, b3 = params
    x2d = jnp.reshape(x, (-1, IN)).astype(jnp.float32)
    h1 = jnp.maximum(x2d @ w1 + b1, 0.0)
    h2 = jnp.maximum(h1 @ w2 + b2, 0.0)
    logits = h2 @ w3 + b3
    return jax.nn.log_softmax(logits, axis=-1)


if __name__ == "__main__":
    key = jax.random.PRNGKey(0)
    k_params, k_x1, k_x2 = jax.random.split(key, 3)

    params = init_params(k_params)

    # Test 1: tiny NCHW batch (single grid step, default bf16 MXU path).
    x_small = jax.random.normal(k_x1, (8, 1, 28, 28), dtype=jnp.float32)
    out_small = jax.block_until_ready(simple_nn_forward(x_small, params))
    assert out_small.shape == (8, 10)
    ref_small = _ref_forward(x_small, params)
    assert jnp.allclose(out_small, ref_small, atol=3e-2, rtol=1e-2)

    # Test 2: batch that is not a tile multiple — exercises the multi-step grid,
    # balanced tiles, single-buffered resident weights and batch padding/slicing.
    x_big = jax.random.normal(k_x2, (300, 1, 28, 28), dtype=jnp.float32)
    out_big = jax.block_until_ready(simple_nn_forward(x_big, params, block_b=128))
    assert out_big.shape == (300, 10)
    ref_big = _ref_forward(x_big, params)
    assert jnp.allclose(out_big, ref_big, atol=3e-2, rtol=1e-2)

    # Test 3: f32 MXU mode at a tighter tolerance than the bf16 path.
    out_f32 = jax.block_until_ready(
        simple_nn_forward(x_big, params, block_b=128, mxu_dtype=jnp.float32))
    assert out_f32.shape == (300, 10)
    assert jnp.allclose(out_f32, ref_big, atol=5e-3, rtol=1e-3)

    # log_softmax rows exponentiate and sum to ~1 (softmax math is f32 in-kernel).
    row_sums = jnp.sum(jnp.exp(out_big), axis=1)
    assert jnp.allclose(row_sums, jnp.ones_like(row_sums), atol=1e-3)

    print("KERNEL_OK")
</pallas_src>

<mosaic_0001>
module attributes {stable_mosaic.version = 11 : i64} {
  func.func @_mlp_kernel(%arg0: i32, %arg1: memref<16x784xbf16, #tpu.memory_space<vmem>>, %arg2: memref<784x384xbf16, #tpu.memory_space<vmem>>, %arg3: memref<1x384xf32, #tpu.memory_space<vmem>>, %arg4: memref<384x128xbf16, #tpu.memory_space<vmem>>, %arg5: memref<1x128xf32, #tpu.memory_space<vmem>>, %arg6: memref<128x128xbf16, #tpu.memory_space<vmem>>, %arg7: memref<1x128xf32, #tpu.memory_space<vmem>>, %arg8: memref<16x128xf32, #tpu.memory_space<vmem>>) attributes {dimension_semantics = [#tpu.dimension_semantics<parallel>], iteration_bounds = array<i64: 1>, scalar_prefetch = 0 : i64, scratch_operands = 0 : i64, tpu.core_type = #tpu.core_type<tc>, window_params = [{transform_indices = @transform_0, window_bounds = array<i64: 16, 784>}, {pipeline_mode = #tpu.pipeline_mode<synchronous>, transform_indices = @transform_1, window_bounds = array<i64: 784, 384>}, {pipeline_mode = #tpu.pipeline_mode<synchronous>, transform_indices = @transform_2, window_bounds = array<i64: 1, 384>}, {pipeline_mode = #tpu.pipeline_mode<synchronous>, transform_indices = @transform_3, window_bounds = array<i64: 384, 128>}, {pipeline_mode = #tpu.pipeline_mode<synchronous>, transform_indices = @transform_4, window_bounds = array<i64: 1, 128>}, {pipeline_mode = #tpu.pipeline_mode<synchronous>, transform_indices = @transform_5, window_bounds = array<i64: 128, 128>}, {pipeline_mode = #tpu.pipeline_mode<synchronous>, transform_indices = @transform_6, window_bounds = array<i64: 1, 128>}, {transform_indices = @transform_7, window_bounds = array<i64: 16, 128>}]} {
    %c0 = arith.constant 0 : index
    %c0_0 = arith.constant 0 : index
    %0 = vector.load %arg1[%c0, %c0_0] : memref<16x784xbf16, #tpu.memory_space<vmem>>, vector<16x784xbf16>
    %c0_1 = arith.constant 0 : index
    %c0_2 = arith.constant 0 : index
    %1 = vector.load %arg2[%c0_1, %c0_2] : memref<784x384xbf16, #tpu.memory_space<vmem>>, vector<784x384xbf16>
    %cst = arith.constant dense<0.000000e+00> : vector<16x384xf32>
    %2 = tpu.matmul %0, %1, %cst {dimension_numbers = #tpu.dot_dimension_numbers<[1], [0], [0], [1], [0, 0, 1, 1], [], []>} : vector<16x784xbf16>, vector<784x384xbf16>, vector<16x384xf32> -> vector<16x384xf32>
    %c0_3 = arith.constant 0 : index
    %c0_4 = arith.constant 0 : index
    %3 = vector.load %arg3[%c0_3, %c0_4] : memref<1x384xf32, #tpu.memory_space<vmem>>, vector<1x384xf32>
    %4 = vector.broadcast %3 : vector<1x384xf32> to vector<16x384xf32>
    %5 = arith.addf %2, %4 : vector<16x384xf32>
    %cst_5 = arith.constant 0.000000e+00 : f32
    %6 = vector.broadcast %cst_5 : f32 to vector<16x384xf32>
    %7 = arith.maximumf %5, %6 : vector<16x384xf32>
    %8 = arith.truncf %7 : vector<16x384xf32> to vector<16x384xbf16>
    %c0_6 = arith.constant 0 : index
    %c0_7 = arith.constant 0 : index
    %9 = vector.load %arg4[%c0_6, %c0_7] : memref<384x128xbf16, #tpu.memory_space<vmem>>, vector<384x128xbf16>
    %cst_8 = arith.constant dense<0.000000e+00> : vector<16x128xf32>
    %10 = tpu.matmul %8, %9, %cst_8 {dimension_numbers = #tpu.dot_dimension_numbers<[1], [0], [0], [1], [0, 0, 1, 1], [], []>} : vector<16x384xbf16>, vector<384x128xbf16>, vector<16x128xf32> -> vector<16x128xf32>
    %c0_9 = arith.constant 0 : index
    %c0_10 = arith.constant 0 : index
    %11 = vector.load %arg5[%c0_9, %c0_10] : memref<1x128xf32, #tpu.memory_space<vmem>>, vector<1x128xf32>
    %12 = vector.broadcast %11 : vector<1x128xf32> to vector<16x128xf32>
    %13 = arith.addf %10, %12 : vector<16x128xf32>
    %cst_11 = arith.constant 0.000000e+00 : f32
    %14 = vector.broadcast %cst_11 : f32 to vector<16x128xf32>
    %15 = arith.maximumf %13, %14 : vector<16x128xf32>
    %16 = arith.truncf %15 : vector<16x128xf32> to vector<16x128xbf16>
    %c0_12 = arith.constant 0 : index
    %c0_13 = arith.constant 0 : index
    %17 = vector.load %arg6[%c0_12, %c0_13] : memref<128x128xbf16, #tpu.memory_space<vmem>>, vector<128x128xbf16>
    %cst_14 = arith.constant dense<0.000000e+00> : vector<16x128xf32>
    %18 = tpu.matmul %16, %17, %cst_14 {dimension_numbers = #tpu.dot_dimension_numbers<[1], [0], [0], [1], [0, 0, 1, 1], [], []>} : vector<16x128xbf16>, vector<128x128xbf16>, vector<16x128xf32> -> vector<16x128xf32>
    %c0_15 = arith.constant 0 : index
    %c0_16 = arith.constant 0 : index
    %19 = vector.load %arg7[%c0_15, %c0_16] : memref<1x128xf32, #tpu.memory_space<vmem>>, vector<1x128xf32>
    %20 = vector.broadcast %19 : vector<1x128xf32> to vector<16x128xf32>
    %21 = arith.addf %18, %20 : vector<16x128xf32>
    %cst_17 = arith.constant dense<0xFF800000> : vector<16xf32>
    %22 = vector.multi_reduction <maximumf>, %21, %cst_17 [1] : vector<16x128xf32> to vector<16xf32>
    %23 = vector.shape_cast %22 : vector<16xf32> to vector<16x1xf32>
    %24 = vector.broadcast %23 : vector<16x1xf32> to vector<16x128xf32>
    %25 = arith.subf %21, %24 : vector<16x128xf32>
    %26 = math.exp %25 : vector<16x128xf32>
    %cst_18 = arith.constant dense<0.000000e+00> : vector<16xf32>
    %27 = vector.multi_reduction <add>, %26, %cst_18 [1] : vector<16x128xf32> to vector<16xf32>
    %28 = vector.shape_cast %27 : vector<16xf32> to vector<16x1xf32>
    %29 = math.log %28 : vector<16x1xf32>
    %30 = vector.broadcast %29 : vector<16x1xf32> to vector<16x128xf32>
    %31 = arith.subf %25, %30 : vector<16x128xf32>
    %c0_19 = arith.constant 0 : index
    %c0_20 = arith.constant 0 : index
    %32 = vector.load %arg8[%c0_19, %c0_20] : memref<16x128xf32, #tpu.memory_space<vmem>>, vector<16x128xf32>
    tpu.vector_store %arg8[%c0_19, %c0_20], %31 {strides = array<i32>} : memref<16x128xf32, #tpu.memory_space<vmem>>, vector<16x128xf32>,
    return
  }
  func.func @transform_0(%arg0: i32) -> (i32, i32) {
    %c0_i32 = arith.constant 0 : i32
    %c0_i32_0 = arith.constant 0 : i32
    return %arg0, %c0_i32 : i32, i32
  }
  func.func @transform_1(%arg0: i32) -> (i32, i32) {
    %c0_i32 = arith.constant 0 : i32
    %c0_i32_0 = arith.constant 0 : i32
    %c0_i32_1 = arith.constant 0 : i32
    return %c0_i32, %c0_i32_0 : i32, i32
  }
  func.func @transform_2(%arg0: i32) -> (i32, i32) {
    %c0_i32 = arith.constant 0 : i32
    %c0_i32_0 = arith.constant 0 : i32
    %c0_i32_1 = arith.constant 0 : i32
    return %c0_i32, %c0_i32_0 : i32, i32
  }
  func.func @transform_3(%arg0: i32) -> (i32, i32) {
    %c0_i32 = arith.constant 0 : i32
    %c0_i32_0 = arith.constant 0 : i32
    %c0_i32_1 = arith.constant 0 : i32
    return %c0_i32, %c0_i32_0 : i32, i32
  }
  func.func @transform_4(%arg0: i32) -> (i32, i32) {
    %c0_i32 = arith.constant 0 : i32
    %c0_i32_0 = arith.constant 0 : i32
    %c0_i32_1 = arith.constant 0 : i32
    return %c0_i32, %c0_i32_0 : i32, i32
  }
  func.func @transform_5(%arg0: i32) -> (i32, i32) {
    %c0_i32 = arith.constant 0 : i32
    %c0_i32_0 = arith.constant 0 : i32
    %c0_i32_1 = arith.constant 0 : i32
    return %c0_i32, %c0_i32_0 : i32, i32
  }
  func.func @transform_6(%arg0: i32) -> (i32, i32) {
    %c0_i32 = arith.constant 0 : i32
    %c0_i32_0 = arith.constant 0 : i32
    %c0_i32_1 = arith.constant 0 : i32
    return %c0_i32, %c0_i32_0 : i32, i32
  }
  func.func @transform_7(%arg0: i32) -> (i32, i32) {
    %c0_i32 = arith.constant 0 : i32
    %c0_i32_0 = arith.constant 0 : i32
    return %arg0, %c0_i32 : i32, i32
  }
}

</mosaic_0001>

<bundles_post_ra>
// kernel: tpu_custom_call.1
= control target key start
LH: loop header
LB: loop body
LE: loop exit
PB: predicated region body
PF: predicated region fallthrough
CT: control target
= control target key end

     0   :  { %12 = vsyncpa [#allocation3], 0  ;;  %s3038_s0 = inlined_call_operand.hbm [shape: bf16[16,784], index: 0, kind: input, shape index: {}]   ;;  %s3039_s1 = inlined_call_operand.hbm [shape: bf16[784,384], index: 1, kind: input, shape index: {}]   ;;  %s3040_s2 = inlined_call_operand.hbm [shape: f32[1,384], index: 2, kind: input, shape index: {}]   ;;  %s3041_s3 = inlined_call_operand.hbm [shape: bf16[384,128], index: 3, kind: input, shape index: {}]   ;;  %s3042_s4 = inlined_call_operand.vmem [shape: f32[1,128], index: 4, kind: input, shape index: {}]   ;;  %s3043_s5 = inlined_call_operand.hbm [shape: bf16[128,128], index: 5, kind: input, shape index: {}]   ;;  %s3044_s6 = inlined_call_operand.vmem [shape: f32[1,128], index: 6, kind: input, shape index: {}]   ;;  %s3045_s7 = inlined_call_operand.hbm [shape: f32[16,128], index: 7, kind: output, shape index: {}]  }
   0x1   :  { %13 = vsyncpa [#allocation6], 0 }
   0x2   :  { %14 = vsyncpa [#allocation9], 0  ;;  %s33_s26 = sshll.u32 %s3039_s1, 4  ;;  %s34_s26 = int_to_ptr.hbm [resolvable:$true] %s33_s26 }
   0x3   :  { %15 = vsyncpa [#allocation4], 0  ;;  %s2917_s27 = smov [#allocation5]   ;;  %s57_s8 = sshll.u32 %s3041_s3, 4  ;;  %s58_s8 = int_to_ptr.hbm [resolvable:$true] %s57_s8 }
   0x4   :  { %s35_s28 = sshll.u32 %s2917_s27, 4  ;;  %s2918_s9 = smov 192   ;;  %s36_s28 = int_to_ptr.vmem [resolvable:$true] %s35_s28 }
   0x5   :  { %s2919_s10 = smov 12   ;;  %s2920_s11 = smov [#allocation8]  }
   0x6   :  { %41 = dma.hbm_to_vmem [thread:$0]  %s34_s26, 18816, %s36_s28, [#allocation6], %s2918_s9, %s2918_s9, %s2919_s10  }
   0x7   :  { %s59_s12 = sshll.u32 %s2920_s11, 4  ;;  %s2921_s13 = smov 64   ;;  %s60_s12 = int_to_ptr.vmem [resolvable:$true] %s59_s12 }
   0x8   :  { %s2922_s14 = smov 4   ;;  %s20_s16 = sshll.u32 %s3038_s0, 4  ;;  %s21_s16 = int_to_ptr.hbm [resolvable:$true] %s20_s16 }
   0x9   :  { %65 = dma.hbm_to_vmem [thread:$0]  %s58_s8, 3072, %s60_s12, [#allocation9], %s2921_s13, %s2921_s13, %s2922_s14  }
   0xa   :  { %s2923_s17 = smov [#allocation2]   ;;  %s47_s20 = sshll.u32 %s3040_s2, 4  ;;  %s48_s20 = int_to_ptr.hbm [resolvable:$true] %s47_s20 }
   0xb   :  { %s22_s18 = sshll.u32 %s2923_s17, 4  ;;  %s2924_s21 = smov 448   ;;  %s23_s18 = int_to_ptr.vmem [resolvable:$true] %s22_s18 }
   0xc   :  { %s2925_s22 = smov 28   ;;  %s2926_s23 = smov [#allocation7]  }
   0xd   :  { %28 = dma.hbm_to_vmem [thread:$0]  %s21_s16, 896, %s23_s18, [#allocation3], %s2924_s21, %s2924_s21, %s2925_s22  }
   0xe   :  { %s49_s24 = sshll.u32 %s2926_s23, 4  ;;  %s72_s27 = sshll.u32 %s3043_s5, 4  ;;  %s50_s24 = int_to_ptr.vmem [resolvable:$true] %s49_s24  ;;  %s73_s27 = int_to_ptr.hbm [resolvable:$true] %s72_s27 }
   0xf   :  { %52 = dma.hbm_to_vmem [thread:$0]  %s48_s20, 48, %s50_s24, [#allocation6]  }
  0x10   :  { %s2927_s0 = smov [#allocation10]  }
  0x11   :  { %s74_s28 = sshll.u32 %s2927_s0, 4  ;;  %s75_s28 = int_to_ptr.vmem [resolvable:$true] %s74_s28 }
  0x12   :  { %80 = dma.hbm_to_vmem [thread:$0]  %s73_s27, 1024, %s75_s28, [#allocation9], %s2921_s13, %s2921_s13, %s2922_s14  }
  0x13   :  { %2909 = dma.done.wait [#allocation3], 896  }
  0x14   :  { %2910 = vsyncadd [#allocation3], 4294966400 }
  0x15   :  { %2911 = dma.done.wait [#allocation6], 18864  }
  0x16   :  { %2912 = vsyncadd [#allocation6], 4294948432 }
  0x17   :  { %2913 = dma.done.wait [#allocation9], 4096  }
  0x18   :  { %2914 = vsyncadd [#allocation9], 4294963200  ;;  %v1922_v0 = vld [vmem:[#allocation5 + $0xa8] sm:$0xf]  ;;  %v2584_v1 = vld [vmem:[#allocation5 + $0xb0] sm:$0xf0] }
  0x19   :  { %v2018_v2 = vld [vmem:[#allocation5 + $0x168] sm:$0xf]  ;;  %v1923_v3 = vor.u32 %v2584_v1, %v1922_v0  ;;  %v2608_v4 = vld [vmem:[#allocation5 + $0x170] sm:$0xf0]  ;;  %v1910_v11 = vld [vmem:[#allocation5 + $0x90] sm:$0xf] }
  0x1a   :  { %v2114_v5 = vld [vmem:[#allocation5 + $0x228] sm:$0xf]  ;;  %v2632_v6 = vld [vmem:[#allocation5 + $0x230] sm:$0xf0]  ;;  %v2019_v7 = vor.u32 %v2608_v4, %v2018_v2  ;;  %v2581_v13 = vld [vmem:[#allocation5 + $0x98] sm:$0xf0] }
  0x1b   :  { %v2115_v8 = vor.u32 %v2632_v6, %v2114_v5  ;;  %v2210_v9 = vld [vmem:[#allocation5 + $0x2e8] sm:$0xf]  ;;  %v2656_v10 = vld [vmem:[#allocation5 + $0x2f0] sm:$0xf0]  ;;  %1139 = vmatpush.bf16.msra.mxu0 %v1923_v3  ;;  %v2006_v14 = vld [vmem:[#allocation5 + $0x150] sm:$0xf]  ;;  %v1911_v16 = vor.u32 %v2581_v13, %v1910_v11 }
  0x1c   :  { %v2211_v12 = vor.u32 %v2656_v10, %v2210_v9  ;;  %v2605_v15 = vld [vmem:[#allocation5 + $0x158] sm:$0xf0]  ;;  %1153 = vmatpush.bf16.msra.mxu1 %v2019_v7  ;;  %v2102_v18 = vld [vmem:[#allocation5 + $0x210] sm:$0xf]  ;;  %v1898_v23 = vld [vmem:[#allocation5 + $0x78] sm:$0xf] }
  0x1d   :  { %1167 = vmatpush.bf16.msra.mxu2 %v2115_v8  ;;  %v2007_v17 = vor.u32 %v2605_v15, %v2006_v14  ;;  %v2629_v19 = vld [vmem:[#allocation5 + $0x218] sm:$0xf0]  ;;  %v2198_v20 = vld [vmem:[#allocation5 + $0x2d0] sm:$0xf]  ;;  %v2578_v24 = vld [vmem:[#allocation5 + $0x80] sm:$0xf0] }
  0x1e   :  { %1181 = vmatpush.bf16.msra.mxu3 %v2211_v12  ;;  %v2103_v21 = vor.u32 %v2629_v19, %v2102_v18  ;;  %v2653_v22 = vld [vmem:[#allocation5 + $0x2d8] sm:$0xf0]  ;;  %v1994_v26 = vld [vmem:[#allocation5 + $0x138] sm:$0xf]  ;;  %v2602_v27 = vld [vmem:[#allocation5 + $0x140] sm:$0xf0]  ;;  %v1899_v29 = vor.u32 %v2578_v24, %v1898_v23 }
  0x1f   :  { %v2199_v25 = vor.u32 %v2653_v22, %v2198_v20  ;;  %v2090_v28 = vld [vmem:[#allocation5 + $0x1f8] sm:$0xf]  ;;  %1140 = vmatpush.bf16.msra.mxu0 %v1911_v16  ;;  %v2626_v30 = vld [vmem:[#allocation5 + $0x200] sm:$0xf0]  ;;  %v1995_v33 = vor.u32 %v2602_v27, %v1994_v26  ;;  %v1886_v35 = vld [vmem:[#allocation5 + $0x60] sm:$0xf] }
  0x20   :  { %v2186_v31 = vld [vmem:[#allocation5 + $0x2b8] sm:$0xf]  ;;  %v2650_v32 = vld [vmem:[#allocation5 + $0x2c0] sm:$0xf0]  ;;  %1154 = vmatpush.bf16.msra.mxu1 %v2007_v17  ;;  %v2091_v34 = vor.u32 %v2626_v30, %v2090_v28  ;;  %v2575_v36 = vld [vmem:[#allocation5 + $0x68] sm:$0xf0] }
  0x21   :  { %1168 = vmatpush.bf16.msra.mxu2 %v2103_v21  ;;  %v1982_v37 = vld [vmem:[#allocation5 + $0x120] sm:$0xf]  ;;  %v2187_v38 = vor.u32 %v2650_v32, %v2186_v31  ;;  %v2599_v39 = vld [vmem:[#allocation5 + $0x128] sm:$0xf0]  ;;  %v1887_v44 = vor.u32 %v2575_v36, %v1886_v35  ;;  %v1874_v47 = vld [vmem:[#allocation5 + $0x48] sm:$0xf] }
  0x22   :  { %1182 = vmatpush.bf16.msra.mxu3 %v2199_v25  ;;  %v2078_v40 = vld [vmem:[#allocation5 + $0x1e0] sm:$0xf]  ;;  %v2623_v41 = vld [vmem:[#allocation5 + $0x1e8] sm:$0xf0]  ;;  %v1983_v45 = vor.u32 %v2599_v39, %v1982_v37  ;;  %v2572_v48 = vld [vmem:[#allocation5 + $0x50] sm:$0xf0] }
  0x23   :  { %v2174_v42 = vld [vmem:[#allocation5 + $0x2a0] sm:$0xf]  ;;  %v2647_v43 = vld [vmem:[#allocation5 + $0x2a8] sm:$0xf0]  ;;  %1141 = vmatpush.bf16.msra.mxu0 %v1899_v29  ;;  %v2079_v46 = vor.u32 %v2623_v41, %v2078_v40  ;;  %v1970_v49 = vld [vmem:[#allocation5 + $0x108] sm:$0xf]  ;;  %v1875_v56 = vor.u32 %v2572_v48, %v1874_v47 }
  0x24   :  { %1155 = vmatpush.bf16.msra.mxu1 %v1995_v33  ;;  %v2175_v50 = vor.u32 %v2647_v43, %v2174_v42  ;;  %v2596_v51 = vld [vmem:[#allocation5 + $0x110] sm:$0xf0]  ;;  %v2066_v52 = vld [vmem:[#allocation5 + $0x1c8] sm:$0xf]  ;;  %v1862_v59 = vld [vmem:[#allocation5 + $0x30] sm:$0xf] }
  0x25   :  { %1169 = vmatpush.bf16.msra.mxu2 %v2091_v34  ;;  %v2620_v53 = vld [vmem:[#allocation5 + $0x1d0] sm:$0xf0]  ;;  %v2162_v54 = vld [vmem:[#allocation5 + $0x288] sm:$0xf]  ;;  %v1971_v57 = vor.u32 %v2596_v51, %v1970_v49  ;;  %v2569_v60 = vld [vmem:[#allocation5 + $0x38] sm:$0xf0] }
  0x26   :  { %1183 = vmatpush.bf16.msra.mxu3 %v2187_v38  ;;  %v2644_v55 = vld [vmem:[#allocation5 + $0x290] sm:$0xf0]  ;;  %v2067_v58 = vor.u32 %v2620_v53, %v2066_v52  ;;  %v1958_v61 = vld [vmem:[#allocation5 + $0xf0] sm:$0xf]  ;;  %v2593_v63 = vld [vmem:[#allocation5 + $0xf8] sm:$0xf0]  ;;  %v1863_v4 = vor.u32 %v2569_v60, %v1862_v59 }
  0x27   :  { %1142 = vmatpush.bf16.msra.mxu0 %v1887_v44  ;;  %v2163_v62 = vor.u32 %v2644_v55, %v2162_v54  ;;  %v2054_v0 = vld [vmem:[#allocation5 + $0x1b0] sm:$0xf]  ;;  %v2617_v1 = vld [vmem:[#allocation5 + $0x1b8] sm:$0xf0]  ;;  %v1959_v5 = vor.u32 %v2593_v63, %v1958_v61  ;;  %v1850_v7 = vld [vmem:[#allocation5 + $0x18] sm:$0xf] }
  0x28   :  { %1156 = vmatpush.bf16.msra.mxu1 %v1983_v45  ;;  %v2150_v2 = vld [vmem:[#allocation5 + $0x270] sm:$0xf]  ;;  %v2641_v3 = vld [vmem:[#allocation5 + $0x278] sm:$0xf0]  ;;  %v2055_v6 = vor.u32 %v2617_v1, %v2054_v0  ;;  %v2566_v8 = vld [vmem:[#allocation5 + $0x20] sm:$0xf0] }
  0x29   :  { %1170 = vmatpush.bf16.msra.mxu2 %v2079_v46  ;;  %v1946_v9 = vld [vmem:[#allocation5 + $0xd8] sm:$0xf]  ;;  %v2151_v10 = vor.u32 %v2641_v3, %v2150_v2  ;;  %v2590_v11 = vld [vmem:[#allocation5 + $0xe0] sm:$0xf0]  ;;  %v1851_v16 = vor.u32 %v2566_v8, %v1850_v7  ;;  %v1838_v17 = vld [vmem:[#allocation5] sm:$0xf] }
  0x2a   :  { %1184 = vmatpush.bf16.msra.mxu3 %v2175_v50  ;;  %v2042_v12 = vld [vmem:[#allocation5 + $0x198] sm:$0xf]  ;;  %v2614_v13 = vld [vmem:[#allocation5 + $0x1a0] sm:$0xf0]  ;;  %v2563_v18 = vld [vmem:[#allocation5 + $0x8] sm:$0xf0]  ;;  %v1947_v19 = vor.u32 %v2590_v11, %v1946_v9 }
  0x2b   :  { %1143 = vmatpush.bf16.msra.mxu0 %v1875_v56  ;;  %v2138_v14 = vld [vmem:[#allocation5 + $0x258] sm:$0xf]  ;;  %v2638_v15 = vld [vmem:[#allocation5 + $0x260] sm:$0xf0]  ;;  %v2043_v20 = vor.u32 %v2614_v13, %v2042_v12  ;;  %v1934_v21 = vld [vmem:[#allocation5 + $0xc0] sm:$0xf]  ;;  %v1839_v31 = vor.u32 %v2563_v18, %v1838_v17 }
  0x2c   :  { %1157 = vmatpush.bf16.msra.mxu1 %v1971_v57  ;;  %v2587_v22 = vld [vmem:[#allocation5 + $0xc8] sm:$0xf0]  ;;  %v2030_v23 = vld [vmem:[#allocation5 + $0x180] sm:$0xf]  ;;  %v2139_v24 = vor.u32 %v2638_v15, %v2138_v14  ;;  %v2306_v28 = vld [vmem:[#allocation5 + $0x3a8] sm:$0xf] }
  0x2d   :  { %1171 = vmatpush.bf16.msra.mxu2 %v2067_v58  ;;  %v2611_v25 = vld [vmem:[#allocation5 + $0x188] sm:$0xf0]  ;;  %v2126_v26 = vld [vmem:[#allocation5 + $0x240] sm:$0xf]  ;;  %v2680_v29 = vld [vmem:[#allocation5 + $0x3b0] sm:$0xf0]  ;;  %v1935_v35 = vor.u32 %v2587_v22, %v1934_v21 }
  0x2e   :  { %1185 = vmatpush.bf16.msra.mxu3 %v2163_v62  ;;  %v2635_v27 = vld [vmem:[#allocation5 + $0x248] sm:$0xf0]  ;;  %v2402_v30 = vld [vmem:[#allocation5 + $0x468] sm:$0xf]  ;;  %v2704_v32 = vld [vmem:[#allocation5 + $0x470] sm:$0xf0]  ;;  %v2031_v36 = vor.u32 %v2611_v25, %v2030_v23  ;;  %v2307_v41 = vor.u32 %v2680_v29, %v2306_v28 }
  0x2f   :  { %1144 = vmatpush.bf16.msra.mxu0 %v1863_v4  ;;  %v2583_v33 = vld [vmem:[#allocation5 + $0xac] sm:$0xf]  ;;  %v1924_v34 = vld [vmem:[#allocation5 + $0xb4] sm:$0xf0]  ;;  %v2414_v37 = vld [vmem:[#allocation5 + $0x480] sm:$0xf]  ;;  %v2127_v40 = vor.u32 %v2635_v27, %v2126_v26  ;;  %v2403_v45 = vor.u32 %v2704_v32, %v2402_v30 }
  0x30   :  { %1158 = vmatpush.bf16.msra.mxu1 %v1959_v5  ;;  %v2707_v38 = vld [vmem:[#allocation5 + $0x488] sm:$0xf0]  ;;  %v1818_v39 = vld [vmem:[#allocation2 + $0x8] sm:$0xf]  ;;  %v2020_v44 = vld [vmem:[#allocation5 + $0x174] sm:$0xf0]  ;;  %v1927_v46 = vor.u32 %v2583_v33, %v1924_v34 }
  0x31   :  { %1172 = vmatpush.bf16.msra.mxu2 %v2055_v6  ;;  %v2559_v42 = vld [vmem:[#allocation2 + $0x20] sm:$0xf0]  ;;  %v2294_v47 = vld [vmem:[#allocation5 + $0x390] sm:$0xf]  ;;  %v2677_v48 = vld [vmem:[#allocation5 + $0x398] sm:$0xf0]  ;;  %v2415_v50 = vor.u32 %v2707_v38, %v2414_v37 }
  0x32   :  { %1186 = vmatpush.bf16.msra.mxu3 %v2151_v10  ;;  %v2607_v43 = vld [vmem:[#allocation5 + $0x16c] sm:$0xf]  ;;  %v2390_v49 = vld [vmem:[#allocation5 + $0x450] sm:$0xf]  ;;  %v2701_v51 = vld [vmem:[#allocation5 + $0x458] sm:$0xf0]  ;;  %v2986_v54 = vor.u32 %v2559_v42, %v1818_v39  ;;  %v2295_v57 = vor.u32 %v2677_v48, %v2294_v47 }
  0x33   :  { %1145 = vmatpush.bf16.msra.mxu0 %v1851_v16  ;;  %v2580_v52 = vld [vmem:[#allocation5 + $0x94] sm:$0xf]  ;;  %v1912_v53 = vld [vmem:[#allocation5 + $0x9c] sm:$0xf0]  ;;  %v1810_v55 = vld [vmem:[#allocation2] sm:$0xf]  ;;  %v2023_v56 = vor.u32 %v2607_v43, %v2020_v44  ;;  %v2391_v61 = vor.u32 %v2701_v51, %v2390_v49 }
  0x34   :  { %1159 = vmatpush.bf16.msra.mxu1 %v1947_v19  ;;  %v2604_v58 = vld [vmem:[#allocation5 + $0x154] sm:$0xf]  ;;  %v2008_v59 = vld [vmem:[#allocation5 + $0x15c] sm:$0xf0]  ;;  %v2558_v60 = vld [vmem:[#allocation2 + $0x18] sm:$0xf0]  ;;  %v1915_v62 = vor.u32 %v2580_v52, %v1912_v53 }
  0x35   :  { %1173 = vmatpush.bf16.msra.mxu2 %v2043_v20  ;;  %v2282_v63 = vld [vmem:[#allocation5 + $0x378] sm:$0xf]  ;;  %v2674_v0 = vld [vmem:[#allocation5 + $0x380] sm:$0xf0]  ;;  %v2988_v2 = vor.u32 %v2558_v60, %v1810_v55  ;;  %v2577_v4 = vld [vmem:[#allocation5 + $0x7c] sm:$0xf]  ;;  %v2011_v9 = vor.u32 %v2604_v58, %v2008_v59 }
  0x36   :  { %1187 = vmatpush.bf16.msra.mxu3 %v2139_v24  ;;  %v2378_v1 = vld [vmem:[#allocation5 + $0x438] sm:$0xf]  ;;  %v2698_v3 = vld [vmem:[#allocation5 + $0x440] sm:$0xf0]  ;;  %v1900_v5 = vld [vmem:[#allocation5 + $0x84] sm:$0xf0]  ;;  %v2283_v10 = vor.u32 %v2674_v0, %v2282_v63 }
  0x37   :  { %1146 = vmatpush.bf16.msra.mxu0 %v1839_v31  ;;  %v2555_v6 = vld [vmem:[#allocation2 + $0x4] sm:$0xf]  ;;  %v1812_v7 = vld [vmem:[#allocation2 + $0x1c] sm:$0xf0]  ;;  %v2556_v8 = vld [vmem:[#allocation2 + $0xc] sm:$0xf]  ;;  %v2379_v15 = vor.u32 %v2698_v3, %v2378_v1  ;;  %v1903_v16 = vor.u32 %v2577_v4, %v1900_v5 }
  0x38   :  { %1160 = vmatpush.bf16.msra.mxu1 %v1935_v35  ;;  %v2601_v11 = vld [vmem:[#allocation5 + $0x13c] sm:$0xf]  ;;  %v1996_v12 = vld [vmem:[#allocation5 + $0x144] sm:$0xf0]  ;;  %v2992_v13 = vor.u32 %v2555_v6, %v1812_v7  ;;  %v1820_v14 = vld [vmem:[#allocation2 + $0x24] sm:$0xf0] }
  0x39   :  { %1174 = vmatpush.bf16.msra.mxu2 %v2031_v36  ;;  %v2270_v17 = vld [vmem:[#allocation5 + $0x360] sm:$0xf]  ;;  %v2671_v18 = vld [vmem:[#allocation5 + $0x368] sm:$0xf0]  ;;  %v2994_v20 = vor.u32 %v2556_v8, %v1820_v14  ;;  %v2574_v22 = vld [vmem:[#allocation5 + $0x64] sm:$0xf]  ;;  %v1999_v24 = vor.u32 %v2601_v11, %v1996_v12 }
  0x3a   :  { %1188 = vmatpush.bf16.msra.mxu3 %v2127_v40  ;;  %1147 = vmatmul.bf16.vlgmr.msra.gmra.mxu0 %v2988_v2  ;;  %v2366_v19 = vld [vmem:[#allocation5 + $0x420] sm:$0xf]  ;;  %v2695_v21 = vld [vmem:[#allocation5 + $0x428] sm:$0xf0]  ;;  %v1888_v23 = vld [vmem:[#allocation5 + $0x6c] sm:$0xf0]  ;;  %v2271_v25 = vor.u32 %v2671_v18, %v2270_v17 }
  0x3b   :  { %1195 = vmatpush.bf16.msrb.mxu0 %v2307_v41  ;;  %1161 = vmatmul.bf16.vlgmr.msra.gmra.mxu1 %v2992_v13  ;;  %v2598_v26 = vld [vmem:[#allocation5 + $0x124] sm:$0xf]  ;;  %v1984_v27 = vld [vmem:[#allocation5 + $0x12c] sm:$0xf0]  ;;  %v2367_v28 = vor.u32 %v2695_v21, %v2366_v19  ;;  %v1891_v29 = vor.u32 %v2574_v22, %v1888_v23  ;;  %v2258_v30 = vld [vmem:[#allocation5 + $0x348] sm:$0xf] }
  0x3c   :  { %1209 = vmatpush.bf16.msrb.mxu1 %v2403_v45  ;;  %1175 = vmatmul.bf16.vlgmr.msra.gmra.mxu2 %v2986_v54  ;;  %v2668_v31 = vld [vmem:[#allocation5 + $0x350] sm:$0xf0]  ;;  %v2354_v32 = vld [vmem:[#allocation5 + $0x408] sm:$0xf]  ;;  %v2571_v34 = vld [vmem:[#allocation5 + $0x4c] sm:$0xf]  ;;  %v1987_v37 = vor.u32 %v2598_v26, %v1984_v27 }
  0x3d   :  { %1230 = vmatpush.bf16.msrb.mxu2 %v2415_v50  ;;  %1189 = vmatmul.bf16.vlgmr.msra.gmra.mxu3 %v2994_v20  ;;  %v2692_v33 = vld [vmem:[#allocation5 + $0x410] sm:$0xf0]  ;;  %v1876_v35 = vld [vmem:[#allocation5 + $0x54] sm:$0xf0]  ;;  %v2595_v36 = vld [vmem:[#allocation5 + $0x10c] sm:$0xf]  ;;  %v2259_v38 = vor.u32 %v2668_v31, %v2258_v30 }
  0x3e   :  { %1237 = vmatpush.bf16.msrb.mxu3 %v1927_v46  ;;  %v1972_v39 = vld [vmem:[#allocation5 + $0x114] sm:$0xf0]  ;;  %v1834_v40 = vld [vmem:[#allocation2 + $0x18] sm:$0xf]  ;;  %v2561_v41 = vld [vmem:[#allocation2 + $0x30] sm:$0xf0]  ;;  %v2355_v42 = vor.u32 %v2692_v33, %v2354_v32  ;;  %v1879_v43 = vor.u32 %v2571_v34, %v1876_v35 }
  0x3f   :  { %1196 = vmatpush.bf16.msrb.mxu0 %v2295_v57  ;;  %v2246_v44 = vld [vmem:[#allocation5 + $0x330] sm:$0xf]  ;;  %v2665_v45 = vld [vmem:[#allocation5 + $0x338] sm:$0xf0]  ;;  %v2568_v48 = vld [vmem:[#allocation5 + $0x34] sm:$0xf]  ;;  %v2998_v50 = vor.u32 %v2561_v41, %v1834_v40  ;;  %v1975_v51 = vor.u32 %v2595_v36, %v1972_v39 }
  0x40   :  { %1210 = vmatpush.bf16.msrb.mxu1 %v2391_v61  ;;  %v2342_v46 = vld [vmem:[#allocation5 + $0x3f0] sm:$0xf]  ;;  %v2689_v47 = vld [vmem:[#allocation5 + $0x3f8] sm:$0xf0]  ;;  %v1864_v49 = vld [vmem:[#allocation5 + $0x3c] sm:$0xf0]  ;;  %v2247_v52 = vor.u32 %v2665_v45, %v2246_v44 }
  0x41   :  { %1251 = vmatpush.bf16.msra.mxu2 %v2023_v56  ;;  %v2592_v53 = vld [vmem:[#allocation5 + $0xf4] sm:$0xf]  ;;  %v1960_v55 = vld [vmem:[#allocation5 + $0xfc] sm:$0xf0]  ;;  %vm1135_vm0 = vcmask 130048   ;;  %v2343_v56 = vor.u32 %v2689_v47, %v2342_v46  ;;  %v1867_v57 = vor.u32 %v2568_v48, %v1864_v49  ;;  %s1793_s10 = sshll.u32 %s3045_s7, 4  ;;  %s1794_s10 = int_to_ptr.hbm [resolvable:$true] %s1793_s10 }
  0x42   :  { %1238 = vmatpush.bf16.msrb.mxu3 %v1915_v62  ;;  %v2234_v58 = vld [vmem:[#allocation5 + $0x318] sm:$0xf]  ;;  %v2662_v59 = vld [vmem:[#allocation5 + $0x320] sm:$0xf0]  ;;  %v2565_v62 = vld [vmem:[#allocation5 + $0x1c] sm:$0xf]  ;;  %v1963_v3 = vor.u32 %v2592_v53, %v1960_v55 }
  0x43   :  { %1197 = vmatpush.bf16.msrb.mxu0 %v2283_v10  ;;  %v2330_v60 = vld [vmem:[#allocation5 + $0x3d8] sm:$0xf]  ;;  %v2686_v61 = vld [vmem:[#allocation5 + $0x3e0] sm:$0xf0]  ;;  %v1852_v63 = vld [vmem:[#allocation5 + $0x24] sm:$0xf0]  ;;  %v2235_v4 = vor.u32 %v2662_v59, %v2234_v58 }
  0x44   :  { %1211 = vmatpush.bf16.msrb.mxu1 %v2379_v15  ;;  %v2589_v0 = vld [vmem:[#allocation5 + $0xdc] sm:$0xf]  ;;  %v1948_v1 = vld [vmem:[#allocation5 + $0xe4] sm:$0xf0]  ;;  %v2222_v5 = vld [vmem:[#allocation5 + $0x300] sm:$0xf]  ;;  %v2331_v8 = vor.u32 %v2686_v61, %v2330_v60 }
  0x45   :  { %1252 = vmatpush.bf16.msra.mxu2 %v2011_v9  ;;  %v2659_v6 = vld [vmem:[#allocation5 + $0x308] sm:$0xf0]  ;;  %v2318_v7 = vld [vmem:[#allocation5 + $0x3c0] sm:$0xf]  ;;  %v1855_v9 = vor.u32 %v2565_v62, %v1852_v63  ;;  %v2562_v11 = vld [vmem:[#allocation5 + $0x4] sm:$0xf]  ;;  %v1951_v21 = vor.u32 %v2589_v0, %v1948_v1 }
  0x46   :  { %1239 = vmatpush.bf16.msrb.mxu3 %v1903_v16  ;;  %v2683_v10 = vld [vmem:[#allocation5 + $0x3c8] sm:$0xf0]  ;;  %v1840_v12 = vld [vmem:[#allocation5 + $0xc] sm:$0xf0]  ;;  %v2116_v15 = vld [vmem:[#allocation5 + $0x234] sm:$0xf0]  ;;  %v2223_v22 = vor.u32 %v2659_v6, %v2222_v5 }
  0x47   :  { %1198 = vmatpush.bf16.msrb.mxu0 %v2271_v25  ;;  %v2631_v14 = vld [vmem:[#allocation5 + $0x22c] sm:$0xf]  ;;  %v2212_v17 = vld [vmem:[#allocation5 + $0x2f4] sm:$0xf0]  ;;  %v2586_v25 = vld [vmem:[#allocation5 + $0xc4] sm:$0xf]  ;;  %v2319_v26 = vor.u32 %v2683_v10, %v2318_v7  ;;  %v1843_v27 = vor.u32 %v2562_v11, %v1840_v12 }
  0x48   :  { %1212 = vmatpush.bf16.msrb.mxu1 %v2367_v28  ;;  %v2655_v16 = vld [vmem:[#allocation5 + $0x2ec] sm:$0xf]  ;;  %v2308_v19 = vld [vmem:[#allocation5 + $0x3b4] sm:$0xf0]  ;;  %v1936_v28 = vld [vmem:[#allocation5 + $0xcc] sm:$0xf0]  ;;  %v2119_v31 = vor.u32 %v2631_v14, %v2116_v15 }
  0x49   :  { %1253 = vmatpush.bf16.msra.mxu2 %v1999_v24  ;;  %v2679_v18 = vld [vmem:[#allocation5 + $0x3ac] sm:$0xf]  ;;  %v1826_v23 = vld [vmem:[#allocation2 + $0x10] sm:$0xf]  ;;  %v2560_v24 = vld [vmem:[#allocation2 + $0x28] sm:$0xf0]  ;;  %v2215_v32 = vor.u32 %v2655_v16, %v2212_v17  ;;  %v1939_v41 = vor.u32 %v2586_v25, %v1936_v28 }
  0x4a   :  { %1240 = vmatpush.bf16.msrb.mxu3 %v1891_v29  ;;  %v2557_v29 = vld [vmem:[#allocation2 + $0x14] sm:$0xf]  ;;  %v1828_v30 = vld [vmem:[#allocation2 + $0x2c] sm:$0xf0]  ;;  %v2703_v33 = vld [vmem:[#allocation5 + $0x46c] sm:$0xf]  ;;  %v2311_v36 = vor.u32 %v2679_v18, %v2308_v19 }
  0x4b   :  { %1199 = vmatpush.bf16.msrb.mxu0 %v2259_v38  ;;  %v2404_v34 = vld [vmem:[#allocation5 + $0x474] sm:$0xf0]  ;;  %v2628_v35 = vld [vmem:[#allocation5 + $0x214] sm:$0xf]  ;;  %v2104_v38 = vld [vmem:[#allocation5 + $0x21c] sm:$0xf0] }
  0x4c   :  { %1213 = vmatpush.bf16.msrb.mxu1 %v2355_v42  ;;  %2424 = vmatmul.msk.bf16.vlgmr.msrb.gmra.mxu2 %vm1135_vm0, %v2998_v50  ;;  %v2652_v39 = vld [vmem:[#allocation5 + $0x2d4] sm:$0xf]  ;;  %v2200_v40 = vld [vmem:[#allocation5 + $0x2dc] sm:$0xf0]  ;;  %v3004_v42 = vor.u32 %v2557_v29, %v1828_v30  ;;  %v2407_v45 = vor.u32 %v2703_v33, %v2404_v34  ;;  %v2107_v46 = vor.u32 %v2628_v35, %v2104_v38  ;;  %v2092_v53 = vld [vmem:[#allocation5 + $0x204] sm:$0xf0] }
  0x4d   :  { %1254 = vmatpush.bf16.msra.mxu2 %v1987_v37  ;;  %v3002_v37 = vor.u32 %v2560_v24, %v1826_v23  ;;  %v2296_v44 = vld [vmem:[#allocation5 + $0x39c] sm:$0xf0]  ;;  %v2203_v47 = vor.u32 %v2652_v39, %v2200_v40  ;;  %v2700_v48 = vld [vmem:[#allocation5 + $0x454] sm:$0xf]  ;;  %v2649_v55 = vld [vmem:[#allocation5 + $0x2bc] sm:$0xf] }
  0x4e   :  { %1241 = vmatpush.bf16.msrb.mxu3 %v1879_v43  ;;  %v2676_v43 = vld [vmem:[#allocation5 + $0x394] sm:$0xf]  ;;  %v2392_v49 = vld [vmem:[#allocation5 + $0x45c] sm:$0xf0]  ;;  %v2284_v58 = vld [vmem:[#allocation5 + $0x384] sm:$0xf0] }
  0x4f   :  { %1200 = vmatpush.bf16.msrb.mxu0 %v2247_v52  ;;  %v2299_v52 = vor.u32 %v2676_v43, %v2296_v44  ;;  %v2395_v59 = vor.u32 %v2700_v48, %v2392_v49  ;;  %v2697_v62 = vld [vmem:[#allocation5 + $0x43c] sm:$0xf]  ;;  %v2380_v63 = vld [vmem:[#allocation5 + $0x444] sm:$0xf0]  ;;  %v2622_v0 = vld [vmem:[#allocation5 + $0x1e4] sm:$0xf] }
  0x50   :  { %1214 = vmatpush.bf16.msrb.mxu1 %v2343_v56  ;;  %v2188_v56 = vld [vmem:[#allocation5 + $0x2c4] sm:$0xf0]  ;;  %v2176_v5 = vld [vmem:[#allocation5 + $0x2ac] sm:$0xf0]  ;;  %v2670_v6 = vld [vmem:[#allocation5 + $0x364] sm:$0xf] }
  0x51   :  { %1255 = vmatpush.bf16.msra.mxu2 %v1975_v51  ;;  %v2625_v51 = vld [vmem:[#allocation5 + $0x1fc] sm:$0xf]  ;;  %v2191_v61 = vor.u32 %v2649_v55, %v2188_v56  ;;  %v2272_v7 = vld [vmem:[#allocation5 + $0x36c] sm:$0xf0]  ;;  %v2694_v11 = vld [vmem:[#allocation5 + $0x424] sm:$0xf] }
  0x52   :  { %1242 = vmatpush.bf16.msrb.mxu3 %v1867_v57  ;;  %v2673_v57 = vld [vmem:[#allocation5 + $0x37c] sm:$0xf]  ;;  %v2095_v60 = vor.u32 %v2625_v51, %v2092_v53  ;;  %v2368_v12 = vld [vmem:[#allocation5 + $0x42c] sm:$0xf0]  ;;  %v2619_v14 = vld [vmem:[#allocation5 + $0x1cc] sm:$0xf]  ;;  %v2275_v15 = vor.u32 %v2670_v6, %v2272_v7 }
  0x53   :  { %1201 = vmatpush.bf16.msrb.mxu0 %v2235_v4  ;;  %v2287_v1 = vor.u32 %v2673_v57, %v2284_v58  ;;  %v2646_v4 = vld [vmem:[#allocation5 + $0x2a4] sm:$0xf]  ;;  %v2068_v16 = vld [vmem:[#allocation5 + $0x1d4] sm:$0xf0]  ;;  %v2643_v17 = vld [vmem:[#allocation5 + $0x28c] sm:$0xf] }
  0x54   :  { %1215 = vmatpush.bf16.msrb.mxu1 %v2331_v8  ;;  %v2383_v8 = vor.u32 %v2697_v62, %v2380_v63  ;;  %v2179_v10 = vor.u32 %v2646_v4, %v2176_v5  ;;  %v2164_v18 = vld [vmem:[#allocation5 + $0x294] sm:$0xf0]  ;;  %v2667_v19 = vld [vmem:[#allocation5 + $0x34c] sm:$0xf]  ;;  %v2071_v23 = vor.u32 %v2619_v14, %v2068_v16  ;;  %v2056_v29 = vld [vmem:[#allocation5 + $0x1bc] sm:$0xf0] }
  0x55   :  { %1256 = vmatpush.bf16.msra.mxu2 %v1963_v3  ;;  %v2080_v3 = vld [vmem:[#allocation5 + $0x1ec] sm:$0xf0]  ;;  %v2167_v24 = vor.u32 %v2643_v17, %v2164_v18  ;;  %v2691_v25 = vld [vmem:[#allocation5 + $0x40c] sm:$0xf]  ;;  %v2640_v30 = vld [vmem:[#allocation5 + $0x274] sm:$0xf] }
  0x56   :  { %1243 = vmatpush.bf16.msrb.mxu3 %v1855_v9  ;;  %v2083_v9 = vor.u32 %v2622_v0, %v2080_v3  ;;  %v2248_v33 = vld [vmem:[#allocation5 + $0x33c] sm:$0xf0]  ;;  %v2688_v38 = vld [vmem:[#allocation5 + $0x3f4] sm:$0xf]  ;;  %v2613_v40 = vld [vmem:[#allocation5 + $0x19c] sm:$0xf] }
  0x57   :  { %1202 = vmatpush.bf16.msrb.mxu0 %v2223_v22  ;;  %v2371_v22 = vor.u32 %v2694_v11, %v2368_v12  ;;  %v2344_v39 = vld [vmem:[#allocation5 + $0x3fc] sm:$0xf0]  ;;  %v2044_v43 = vld [vmem:[#allocation5 + $0x1a4] sm:$0xf0]  ;;  %v2637_v44 = vld [vmem:[#allocation5 + $0x25c] sm:$0xf] }
  0x58   :  { %1216 = vmatpush.bf16.msrb.mxu1 %v2319_v26  ;;  %v2356_v26 = vld [vmem:[#allocation5 + $0x414] sm:$0xf0]  ;;  %v2347_v48 = vor.u32 %v2688_v38, %v2344_v39  ;;  %v2685_v49 = vld [vmem:[#allocation5 + $0x3dc] sm:$0xf]  ;;  %v2332_v51 = vld [vmem:[#allocation5 + $0x3e4] sm:$0xf0] }
  0x59   :  { %1257 = vmatpush.bf16.msra.mxu2 %v1951_v21  ;;  %v2260_v21 = vld [vmem:[#allocation5 + $0x354] sm:$0xf0]  ;;  %v2359_v34 = vor.u32 %v2691_v25, %v2356_v26  ;;  %v2610_v55 = vld [vmem:[#allocation5 + $0x184] sm:$0xf]  ;;  %v2032_v56 = vld [vmem:[#allocation5 + $0x18c] sm:$0xf0] }
  0x5a   :  { %1244 = vmatpush.bf16.msrb.mxu3 %v1843_v27  ;;  %1203 = vmatmul.bf16.vlgmr.msrb.gmra.mxu0 %v3002_v37  ;;  %v2616_v27 = vld [vmem:[#allocation5 + $0x1b4] sm:$0xf]  ;;  %v2263_v28 = vor.u32 %v2667_v19, %v2260_v21  ;;  %v2634_v57 = vld [vmem:[#allocation5 + $0x244] sm:$0xf]  ;;  %v1930_v62 = vld [vmem:[#allocation5 + $0xb0] sm:$0xf]  ;;  %v2035_v6 = vor.u32 %v2610_v55, %v2032_v56 }
  0x5b   :  { %1265 = vmatpush.bf16.msra.mxu0 %v2119_v31  ;;  %1217 = vmatmul.bf16.vlgmr.msrb.gmra.mxu1 %v3004_v42  ;;  %v2152_v31 = vld [vmem:[#allocation5 + $0x27c] sm:$0xf0]  ;;  %v2059_v35 = vor.u32 %v2616_v27, %v2056_v29  ;;  %v2585_v63 = vld [vmem:[#allocation5 + $0xb8] sm:$0xf0]  ;;  %v2026_v0 = vld [vmem:[#allocation5 + $0x170] sm:$0xf] }
  0x5c   :  { %1279 = vmatpush.bf16.msra.mxu1 %v2215_v32  ;;  %v2664_v32 = vld [vmem:[#allocation5 + $0x334] sm:$0xf]  ;;  %v2609_v3 = vld [vmem:[#allocation5 + $0x178] sm:$0xf0]  ;;  %v2706_v4 = vld [vmem:[#allocation5 + $0x484] sm:$0xf]  ;;  %v1931_v11 = vor.u32 %v2585_v63, %v1930_v62 }
  0x5d   :  { %1258 = vmatpush.bf16.msra.mxu2 %v1939_v41  ;;  %1245 = vmatmul.bf16.vlgmr.msrb.gmra.mxu3 %v2988_v2  ;;  %v2251_v41 = vor.u32 %v2664_v32, %v2248_v33  ;;  %v2416_v5 = vld [vmem:[#allocation5 + $0x48c] sm:$0xf0]  ;;  %v1918_v12 = vld [vmem:[#allocation5 + $0x98] sm:$0xf]  ;;  %v2582_v14 = vld [vmem:[#allocation5 + $0xa0] sm:$0xf0] }
  0x5e   :  { %1293 = vmatpush.bf16.msra.mxu3 %v2311_v36  ;;  %v2155_v36 = vor.u32 %v2640_v30, %v2152_v31  ;;  %v2218_v16 = vld [vmem:[#allocation5 + $0x2f0] sm:$0xf]  ;;  %v2657_v17 = vld [vmem:[#allocation5 + $0x2f8] sm:$0xf0]  ;;  %v2419_v18 = vor.u32 %v2706_v4, %v2416_v5  ;;  %v2014_v21 = vld [vmem:[#allocation5 + $0x158] sm:$0xf]  ;;  %v1919_v25 = vor.u32 %v2582_v14, %v1918_v12 }
  0x5f   :  { %1266 = vmatpush.bf16.msra.mxu0 %v2107_v46  ;;  %v2661_v46 = vld [vmem:[#allocation5 + $0x31c] sm:$0xf]  ;;  %v1906_v26 = vld [vmem:[#allocation5 + $0x80] sm:$0xf]  ;;  %v2219_v27 = vor.u32 %v2657_v17, %v2218_v16  ;;  %v2579_v29 = vld [vmem:[#allocation5 + $0x88] sm:$0xf0] }
  0x60   :  { %1280 = vmatpush.bf16.msra.mxu1 %v2203_v47  ;;  %1259 = vmatmul.bf16.vlgmr.msra.gmra.mxu2 %v2992_v13  ;;  %v2236_v47 = vld [vmem:[#allocation5 + $0x324] sm:$0xf0]  ;;  %v2206_v30 = vld [vmem:[#allocation5 + $0x2d8] sm:$0xf]  ;;  %v2654_v31 = vld [vmem:[#allocation5 + $0x2e0] sm:$0xf0]  ;;  %v1907_v38 = vor.u32 %v2579_v29, %v1906_v26 }
  0x61   :  { %1307 = vmatpush.bf16.msrb.mxu2 %v2407_v45  ;;  %v2140_v45 = vld [vmem:[#allocation5 + $0x264] sm:$0xf0]  ;;  %v2239_v58 = vor.u32 %v2661_v46, %v2236_v47  ;;  %v2002_v32 = vld [vmem:[#allocation5 + $0x140] sm:$0xf]  ;;  %v2603_v33 = vld [vmem:[#allocation5 + $0x148] sm:$0xf0] }
  0x62   :  { %1294 = vmatpush.bf16.msra.mxu3 %v2299_v52  ;;  %v2047_v52 = vor.u32 %v2613_v40, %v2044_v43  ;;  %v2143_v53 = vor.u32 %v2637_v44, %v2140_v45  ;;  %v1894_v39 = vld [vmem:[#allocation5 + $0x68] sm:$0xf]  ;;  %v2207_v40 = vor.u32 %v2654_v31, %v2206_v30  ;;  %v2576_v43 = vld [vmem:[#allocation5 + $0x70] sm:$0xf0]  ;;  %v2194_v44 = vld [vmem:[#allocation5 + $0x2c0] sm:$0xf] }
  0x63   :  { %1267 = vmatpush.bf16.msra.mxu0 %v2095_v60  ;;  %v2658_v60 = vld [vmem:[#allocation5 + $0x304] sm:$0xf]  ;;  %v2651_v45 = vld [vmem:[#allocation5 + $0x2c8] sm:$0xf0]  ;;  %v1990_v46 = vld [vmem:[#allocation5 + $0x128] sm:$0xf] }
  0x64   :  { %1281 = vmatpush.bf16.msra.mxu1 %v2191_v61  ;;  %v2224_v61 = vld [vmem:[#allocation5 + $0x30c] sm:$0xf0]  ;;  %v2600_v47 = vld [vmem:[#allocation5 + $0x130] sm:$0xf0]  ;;  %v2195_v55 = vor.u32 %v2651_v45, %v2194_v44  ;;  %v1858_v14 = vld [vmem:[#allocation5 + $0x20] sm:$0xf] }
  0x65   :  { %1308 = vmatpush.bf16.msrb.mxu2 %v2395_v59  ;;  %v2128_v59 = vld [vmem:[#allocation5 + $0x24c] sm:$0xf0]  ;;  %v1991_v56 = vor.u32 %v2600_v47, %v1990_v46  ;;  %v2624_v4 = vld [vmem:[#allocation5 + $0x1f0] sm:$0xf0]  ;;  %v2621_v17 = vld [vmem:[#allocation5 + $0x1d8] sm:$0xf0] }
  0x66   :  { %1295 = vmatpush.bf16.msra.mxu3 %v2287_v1  ;;  %v2335_v1 = vor.u32 %v2685_v49, %v2332_v51  ;;  %v2131_v7 = vor.u32 %v2634_v57, %v2128_v59  ;;  %v2098_v49 = vld [vmem:[#allocation5 + $0x200] sm:$0xf]  ;;  %v2627_v51 = vld [vmem:[#allocation5 + $0x208] sm:$0xf0]  ;;  %v2573_v57 = vld [vmem:[#allocation5 + $0x58] sm:$0xf0] }
  0x67   :  { %1268 = vmatpush.bf16.msra.mxu0 %v2083_v9  ;;  %v2320_v9 = vld [vmem:[#allocation5 + $0x3cc] sm:$0xf0]  ;;  %v2648_v59 = vld [vmem:[#allocation5 + $0x2b0] sm:$0xf0]  ;;  %v2099_v62 = vor.u32 %v2627_v51, %v2098_v49  ;;  %v2062_v30 = vld [vmem:[#allocation5 + $0x1b8] sm:$0xf] }
  0x68   :  { %1282 = vmatpush.bf16.msra.mxu1 %v2179_v10  ;;  %v2227_v10 = vor.u32 %v2658_v60, %v2224_v61  ;;  %v1978_v60 = vld [vmem:[#allocation5 + $0x110] sm:$0xf]  ;;  %v2597_v61 = vld [vmem:[#allocation5 + $0x118] sm:$0xf0]  ;;  %v2618_v31 = vld [vmem:[#allocation5 + $0x1c0] sm:$0xf0] }
  0x69   :  { %1309 = vmatpush.bf16.msrb.mxu2 %v2383_v8  ;;  %v2682_v8 = vld [vmem:[#allocation5 + $0x3c4] sm:$0xf]  ;;  %v1979_v5 = vor.u32 %v2597_v61, %v1978_v60  ;;  %v2074_v16 = vld [vmem:[#allocation5 + $0x1d0] sm:$0xf]  ;;  %v2050_v46 = vld [vmem:[#allocation5 + $0x1a0] sm:$0xf] }
  0x6a   :  { %1296 = vmatpush.bf16.msra.mxu3 %v2275_v15  ;;  %v2027_v15 = vor.u32 %v2609_v3, %v2026_v0  ;;  %v2323_v19 = vor.u32 %v2682_v8, %v2320_v9  ;;  %v1870_v0 = vld [vmem:[#allocation5 + $0x38] sm:$0xf]  ;;  %v2086_v3 = vld [vmem:[#allocation5 + $0x1e8] sm:$0xf]  ;;  %v2645_v8 = vld [vmem:[#allocation5 + $0x298] sm:$0xf0]  ;;  %v2075_v26 = vor.u32 %v2621_v17, %v2074_v16 }
  0x6b   :  { %1269 = vmatpush.bf16.msra.mxu0 %v2071_v23  ;;  %v2122_v23 = vld [vmem:[#allocation5 + $0x230] sm:$0xf]  ;;  %v1966_v9 = vld [vmem:[#allocation5 + $0xf8] sm:$0xf]  ;;  %v2615_v47 = vld [vmem:[#allocation5 + $0x1a8] sm:$0xf0] }
  0x6c   :  { %1283 = vmatpush.bf16.msra.mxu1 %v2167_v24  ;;  %v2633_v24 = vld [vmem:[#allocation5 + $0x238] sm:$0xf0]  ;;  %v2134_v51 = vld [vmem:[#allocation5 + $0x248] sm:$0xf]  ;;  %v2696_v16 = vld [vmem:[#allocation5 + $0x430] sm:$0xf0] }
  0x6d   :  { %1310 = vmatpush.bf16.msrb.mxu2 %v2371_v22  ;;  %v2606_v22 = vld [vmem:[#allocation5 + $0x160] sm:$0xf0]  ;;  %v2038_v61 = vld [vmem:[#allocation5 + $0x188] sm:$0xf]  ;;  %s2929_s11 = smov 128   ;;  %s2930_s12 = smov 8  }
  0x6e   :  { %1297 = vmatpush.bf16.msra.mxu3 %v2263_v28  ;;  %v2015_v28 = vor.u32 %v2606_v22, %v2014_v21  ;;  %v2158_v21 = vld [vmem:[#allocation5 + $0x278] sm:$0xf]  ;;  %v2642_v22 = vld [vmem:[#allocation5 + $0x280] sm:$0xf0] }
  0x6f   :  { %1270 = vmatpush.bf16.msra.mxu0 %v2059_v35  ;;  %v2110_v35 = vld [vmem:[#allocation5 + $0x218] sm:$0xf]  ;;  %v2159_v29 = vor.u32 %v2642_v22, %v2158_v21  ;;  %v2693_v21 = vld [vmem:[#allocation5 + $0x418] sm:$0xf0] }
  0x70   :  { %1284 = vmatpush.bf16.msra.mxu1 %v2155_v36  ;;  %v2630_v36 = vld [vmem:[#allocation5 + $0x220] sm:$0xf0] }
  0x71   :  { %1311 = vmatpush.bf16.msrb.mxu2 %v2359_v34  ;;  %v2123_v34 = vor.u32 %v2633_v24, %v2122_v23  ;;  %v1954_v23 = vld [vmem:[#allocation5 + $0xe0] sm:$0xf]  ;;  %v2591_v24 = vld [vmem:[#allocation5 + $0xe8] sm:$0xf0] }
  0x72   :  { %1298 = vmatpush.bf16.msra.mxu3 %v2251_v41  ;;  %v2003_v41 = vor.u32 %v2603_v33, %v2002_v32  ;;  %v1955_v32 = vor.u32 %v2591_v24, %v1954_v23  ;;  %v1942_v33 = vld [vmem:[#allocation5 + $0xc8] sm:$0xf]  ;;  %v2254_v24 = vld [vmem:[#allocation5 + $0x338] sm:$0xf] }
  0x73   :  { %1271 = vmatpush.bf16.msra.mxu0 %v2047_v52  ;;  %v1895_v52 = vor.u32 %v2576_v43, %v1894_v39  ;;  %v2681_v39 = vld [vmem:[#allocation5 + $0x3b8] sm:$0xf0]  ;;  %v2063_v43 = vor.u32 %v2618_v31, %v2062_v30  ;;  %v2242_v30 = vld [vmem:[#allocation5 + $0x320] sm:$0xf]  ;;  %v2663_v31 = vld [vmem:[#allocation5 + $0x328] sm:$0xf0] }
  0x74   :  { %1285 = vmatpush.bf16.msra.mxu1 %v2143_v53  ;;  %v1882_v53 = vld [vmem:[#allocation5 + $0x50] sm:$0xf] }
  0x75   :  { %1312 = vmatpush.bf16.msrb.mxu2 %v2347_v48  ;;  %v2111_v48 = vor.u32 %v2630_v36, %v2110_v35  ;;  %v1883_v63 = vor.u32 %v2573_v57, %v1882_v53  ;;  %v2639_v35 = vld [vmem:[#allocation5 + $0x268] sm:$0xf0]  ;;  %v2588_v36 = vld [vmem:[#allocation5 + $0xd0] sm:$0xf0]  ;;  %v2398_v57 = vld [vmem:[#allocation5 + $0x458] sm:$0xf] }
  0x76   :  { %1299 = vmatpush.bf16.msra.mxu3 %v2239_v58  ;;  %v2182_v58 = vld [vmem:[#allocation5 + $0x2a8] sm:$0xf] }
  0x77   :  { %1272 = vmatpush.bf16.msra.mxu0 %v2035_v6  ;;  %v2570_v6 = vld [vmem:[#allocation5 + $0x40] sm:$0xf0] }
  0x78   :  { %1286 = vmatpush.bf16.msra.mxu1 %v2131_v7  ;;  %v2170_v7 = vld [vmem:[#allocation5 + $0x290] sm:$0xf]  ;;  %v1871_v12 = vor.u32 %v2570_v6, %v1870_v0  ;;  %v2422_v0 = vld [vmem:[#allocation5 + $0x488] sm:$0xf]  ;;  %v2386_v6 = vld [vmem:[#allocation5 + $0x440] sm:$0xf] }
  0x79   :  { %1313 = vmatpush.bf16.msrb.mxu2 %v2335_v1  ;;  %v2183_v1 = vor.u32 %v2648_v59, %v2182_v58  ;;  %v2702_v58 = vld [vmem:[#allocation5 + $0x460] sm:$0xf0]  ;;  %v2051_v59 = vor.u32 %v2615_v47, %v2050_v46  ;;  %v2712_v46 = vld [vmem:[#allocation8 + $0x18] sm:$0xff]  ;;  %v2711_v47 = vld [vmem:[#allocation8 + $0x10] sm:$0xff] }
  0x7a   :  { %1300 = vmatpush.bf16.msra.mxu3 %v2227_v10  ;;  %1273 = vmatmul.bf16.vlgmr.msra.gmra.mxu0 %v2986_v54  ;;  %v2594_v10 = vld [vmem:[#allocation5 + $0x100] sm:$0xf0] }
  0x7b   :  { %1328 = vmatpush.bf16.msrb.mxu0 %v2419_v18  ;;  %1287 = vmatmul.bf16.vlgmr.msra.gmra.mxu1 %v2994_v20  ;;  %v1967_v18 = vor.u32 %v2594_v10, %v1966_v9 }
  0x7c   :  { %1335 = vmatpush.bf16.msrb.mxu1 %v1931_v11  ;;  %v2087_v11 = vor.u32 %v2624_v4, %v2086_v3  ;;  %v2399_v3 = vor.u32 %v2702_v58, %v2398_v57  ;;  %v2290_v4 = vld [vmem:[#allocation5 + $0x380] sm:$0xf] }
  0x7d   :  { %1314 = vmatpush.bf16.msrb.mxu2 %v2323_v19  ;;  %1301 = vmatmul.bf16.vlgmr.msra.gmra.mxu3 %v3002_v37  ;;  %v2567_v19 = vld [vmem:[#allocation5 + $0x28] sm:$0xf0] }
  0x7e   :  { %1349 = vmatpush.bf16.msrb.mxu3 %v2027_v15  ;;  %v2171_v15 = vor.u32 %v2645_v8, %v2170_v7  ;;  %v2699_v7 = vld [vmem:[#allocation5 + $0x448] sm:$0xf0] }
  0x7f   :  { %1363 = vmatpush.bf16.msra.mxu0 %v2123_v34  ;;  %v2146_v34 = vld [vmem:[#allocation5 + $0x260] sm:$0xf] }
  0x80   :  { %1336 = vmatpush.bf16.msrb.mxu1 %v1919_v25  ;;  %1315 = vmatmul.bf16.vlgmr.msrb.gmra.mxu2 %v3004_v42  ;;  %v1846_v25 = vld [vmem:[#allocation5 + $0x8] sm:$0xf]  ;;  %v2147_v45 = vor.u32 %v2639_v35, %v2146_v34  ;;  %v2243_v34 = vor.u32 %v2663_v31, %v2242_v30 }
  0x81   :  { %1377 = vmatpush.bf16.msra.mxu2 %v2219_v27  ;;  %v1859_v27 = vor.u32 %v2567_v19, %v1858_v14  ;;  %v2672_v14 = vld [vmem:[#allocation5 + $0x370] sm:$0xf0]  ;;  %v2362_v19 = vld [vmem:[#allocation5 + $0x410] sm:$0xf] }
  0x82   :  { %1350 = vmatpush.bf16.msrb.mxu3 %v2015_v28  ;;  %v2564_v28 = vld [vmem:[#allocation5 + $0x10] sm:$0xf0]  ;;  %v2363_v23 = vor.u32 %v2693_v21, %v2362_v19 }
  0x83   :  { %1364 = vmatpush.bf16.msra.mxu0 %v2111_v48  ;;  %v1847_v44 = vor.u32 %v2564_v28, %v1846_v25  ;;  %v1943_v48 = vor.u32 %v2588_v36, %v1942_v33  ;;  %v2350_v25 = vld [vmem:[#allocation5 + $0x3f8] sm:$0xf]  ;;  %v2687_v33 = vld [vmem:[#allocation5 + $0x3e8] sm:$0xf0]  ;;  %v2230_v36 = vld [vmem:[#allocation5 + $0x308] sm:$0xf] }
  0x84   :  { %1337 = vmatpush.bf16.msrb.mxu1 %v1907_v38  ;;  %v2314_v38 = vld [vmem:[#allocation5 + $0x3b0] sm:$0xf]  ;;  %v2720_v19 = vld [vmem:[#allocation8 + $0x58] sm:$0xff] }
  0x85   :  { %1378 = vmatpush.bf16.msra.mxu2 %v2207_v40  ;;  %v2410_v40 = vld [vmem:[#allocation5 + $0x470] sm:$0xf]  ;;  %v2315_v49 = vor.u32 %v2681_v39, %v2314_v38  ;;  %v2660_v38 = vld [vmem:[#allocation5 + $0x310] sm:$0xf0]  ;;  %v2326_v39 = vld [vmem:[#allocation5 + $0x3c8] sm:$0xf] }
  0x86   :  { %1351 = vmatpush.bf16.msrb.mxu3 %v2003_v41  ;;  %v2705_v41 = vld [vmem:[#allocation5 + $0x478] sm:$0xf0] }
  0x87   :  { %1365 = vmatpush.bf16.msra.mxu0 %v2099_v62  ;;  %v2411_v53 = vor.u32 %v2705_v41, %v2410_v40  ;;  %v2612_v62 = vld [vmem:[#allocation5 + $0x190] sm:$0xf0]  ;;  %v2714_v41 = vld [vmem:[#allocation8 + $0x28] sm:$0xff] }
  0x88   :  { %1338 = vmatpush.bf16.msrb.mxu1 %v1895_v52  ;;  %v2636_v52 = vld [vmem:[#allocation5 + $0x250] sm:$0xf0]  ;;  %v2039_v8 = vor.u32 %v2612_v62, %v2038_v61 }
  0x89   :  { %1379 = vmatpush.bf16.msra.mxu2 %v2195_v55  ;;  %v2302_v55 = vld [vmem:[#allocation5 + $0x398] sm:$0xf]  ;;  %v2135_v60 = vor.u32 %v2636_v52, %v2134_v51  ;;  %v2684_v40 = vld [vmem:[#allocation5 + $0x3d0] sm:$0xf0]  ;;  %v2710_v52 = vld [vmem:[#allocation8 + $0x8] sm:$0xff] }
  0x8a   :  { %1352 = vmatpush.bf16.msrb.mxu3 %v1991_v56  ;;  %2425 = vmatmul.msk.bf16.vlgmr.msrb.gmra.mxu0 %vm1135_vm0, %v2998_v50  ;;  %v2678_v56 = vld [vmem:[#allocation5 + $0x3a0] sm:$0xf0]  ;;  %v2724_v62 = vld [vmem:[#allocation8 + $0x78] sm:$0xff] }
  0x8b   :  { %1366 = vmatpush.bf16.msra.mxu0 %v2087_v11  ;;  %v2387_v11 = vor.u32 %v2699_v7, %v2386_v6 }
  0x8c   :  { %1339 = vmatpush.bf16.msrb.mxu1 %v1883_v63  ;;  %v2303_v63 = vor.u32 %v2678_v56, %v2302_v55  ;;  %v2709_v55 = vld [vmem:[#allocation8] sm:$0xff] }
  0x8d   :  { %1380 = vmatpush.bf16.msra.mxu2 %v2183_v1  ;;  %v2708_v1 = vld [vmem:[#allocation5 + $0x490] sm:$0xf0] }
  0x8e   :  { %1353 = vmatpush.bf16.msrb.mxu3 %v1979_v5  ;;  %v2675_v5 = vld [vmem:[#allocation5 + $0x388] sm:$0xf0]  ;;  %v2423_v9 = vor.u32 %v2708_v1, %v2422_v0 }
  0x8f   :  { %1367 = vmatpush.bf16.msra.mxu0 %v2075_v26  ;;  %v2291_v10 = vor.u32 %v2675_v5, %v2290_v4  ;;  %v2690_v26 = vld [vmem:[#allocation5 + $0x400] sm:$0xf0]  ;;  %v2723_v5 = vld [vmem:[#allocation8 + $0x70] sm:$0xff] }
  0x90   :  { %1340 = vmatpush.bf16.msrb.mxu1 %v1871_v12  ;;  %v2278_v12 = vld [vmem:[#allocation5 + $0x368] sm:$0xf] }
  0x91   :  { %1381 = vmatpush.bf16.msra.mxu2 %v2171_v15  ;;  %v2374_v15 = vld [vmem:[#allocation5 + $0x428] sm:$0xf]  ;;  %v2279_v17 = vor.u32 %v2672_v14, %v2278_v12 }
  0x92   :  { %1354 = vmatpush.bf16.msrb.mxu3 %v1967_v18  ;;  %v2669_v18 = vld [vmem:[#allocation5 + $0x358] sm:$0xf0] }
  0x93   :  { %1368 = vmatpush.bf16.msra.mxu0 %v2063_v43  ;;  %v2231_v43 = vor.u32 %v2660_v38, %v2230_v36 }
  0x94   :  { %1341 = vmatpush.bf16.msrb.mxu1 %v1859_v27  ;;  %v2716_v27 = vld [vmem:[#allocation8 + $0x38] sm:$0xff] }
  0x95   :  { %1382 = vmatpush.bf16.msra.mxu2 %v2159_v29  ;;  %v2351_v29 = vor.u32 %v2690_v26, %v2350_v25  ;;  %v2718_v26 = vld [vmem:[#allocation8 + $0x48] sm:$0xff] }
  0x96   :  { %1355 = vmatpush.bf16.msrb.mxu3 %v1955_v32  ;;  %v2338_v32 = vld [vmem:[#allocation5 + $0x3e0] sm:$0xf] }
  0x97   :  { %1369 = vmatpush.bf16.msra.mxu0 %v2051_v59  ;;  %v2339_v35 = vor.u32 %v2687_v33, %v2338_v32 }
  0x98   :  { %1342 = vmatpush.bf16.msrb.mxu1 %v1847_v44  ;;  %v2327_v44 = vor.u32 %v2684_v40, %v2326_v39 }
  0x99   :  { %1383 = vmatpush.bf16.msra.mxu2 %v2147_v45  ;;  %v2713_v45 = vld [vmem:[#allocation8 + $0x20] sm:$0xff] }
  0x9a   :  { %1356 = vmatpush.bf16.msrb.mxu3 %v1943_v48  ;;  %v3024_v48 = vld [vmem:[#allocation7] sm:$0x7] }
  0x9b   :  { %1343 = vmatmul.bf16.vlgmr.msrb.gmra.mxu1 %v2988_v2  ;;  %1370 = vmatpush.bf16.msra.mxu0 %v2039_v8  ;;  %v2375_v2 = vor.u32 %v2696_v16, %v2374_v15  ;;  %v2721_v16 = vld [vmem:[#allocation8 + $0x60] sm:$0xff] }
  0x9c   :  { %1391 = vmatpush.bf16.msra.mxu1 %v2315_v49 }
  0x9d   :  { %1357 = vmatmul.bf16.vlgmr.msrb.gmra.mxu3 %v2992_v13  ;;  %1384 = vmatpush.bf16.msra.mxu2 %v2135_v60  ;;  %v2266_v13 = vld [vmem:[#allocation5 + $0x350] sm:$0xf] }
  0x9e   :  { %1405 = vmatpush.bf16.msra.mxu3 %v2411_v53  ;;  %1371 = vmatmul.bf16.vlgmr.msra.gmra.mxu0 %v2986_v54  ;;  %v2267_v22 = vor.u32 %v2669_v18, %v2266_v13  ;;  %v2715_v54 = vld [vmem:[#allocation8 + $0x30] sm:$0xff] }
  0x9f   :  { %1426 = vmatpush.bf16.msrb.mxu0 %v2423_v9  ;;  %v2722_v9 = vld [vmem:[#allocation8 + $0x68] sm:$0xff] }
  0xa0   :  { %1392 = vmatpush.bf16.msra.mxu1 %v2303_v63  ;;  %1385 = vmatmul.bf16.vlgmr.msra.gmra.mxu2 %v2994_v20  ;;  %v2666_v20 = vld [vmem:[#allocation5 + $0x340] sm:$0xf0] }
  0xa1   :  { %v2255_v28 = vor.u32 %v2666_v20, %v2254_v24  ;;  %1638 = vmatpush.bf16.msrb.mxu2 %v2716_v27  ;;  %v2719_v20 = vld [vmem:[#allocation8 + $0x50] sm:$0xff]  ;;  %v311_v27 = vperm.slane %v3024_v48, 1 }
  0xa2   :  { %1406 = vmatpush.bf16.msra.mxu3 %v2399_v3 }
  0xa3   :  { %1652 = vmatpush.bf16.msra.mxu0 %v2724_v62 }
  0xa4   :  { %1393 = vmatpush.bf16.msra.mxu1 %v2291_v10 }
  0xa5   :  { %1639 = vmatpush.bf16.msrb.mxu2 %v2715_v54 }
  0xa6   :  { %1407 = vmatpush.bf16.msra.mxu3 %v2387_v11 }
  0xa7   :  { %1653 = vmatpush.bf16.msra.mxu0 %v2723_v5  ;;  %v2725_v5 = vld [vmem:[#allocation8 + $0x80] sm:$0xff] }
  0xa8   :  { %1394 = vmatpush.bf16.msra.mxu1 %v2279_v17 }
  0xa9   :  { %1640 = vmatpush.bf16.msrb.mxu2 %v2714_v41 }
  0xaa   :  { %1408 = vmatpush.bf16.msra.mxu3 %v2375_v2 }
  0xab   :  { %1654 = vmatpush.bf16.msra.mxu0 %v2722_v9 }
  0xac   :  { %1395 = vmatpush.bf16.msra.mxu1 %v2267_v22 }
  0xad   :  { %1641 = vmatpush.bf16.msrb.mxu2 %v2713_v45 }
  0xae   :  { %1409 = vmatpush.bf16.msra.mxu3 %v2363_v23  ;;  %2426 = vmatmul.msk.bf16.vlgmr.msrb.gmra.mxu0 %vm1135_vm0, %v2998_v50  ;;  %v310_v50 = vperm.slane %v3024_v48, 0 }
  0xaf   :  { %1655 = vmatpush.bf16.msra.mxu0 %v2721_v16 }
  0xb0   :  { %1396 = vmatpush.bf16.msra.mxu1 %v2255_v28  ;;  %v2717_v28 = vld [vmem:[#allocation8 + $0x40] sm:$0xff] }
  0xb1   :  { %1642 = vmatpush.bf16.msrb.mxu2 %v2712_v46  ;;  %v2732_v46 = vld [vmem:[#allocation8 + $0xb8] sm:$0xff] }
  0xb2   :  { %1410 = vmatpush.bf16.msra.mxu3 %v2351_v29 }
  0xb3   :  { %1656 = vmatpush.bf16.msra.mxu0 %v2720_v19 }
  0xb4   :  { %1397 = vmatpush.bf16.msra.mxu1 %v2243_v34 }
  0xb5   :  { %1643 = vmatpush.bf16.msrb.mxu2 %v2711_v47 }
  0xb6   :  { %1411 = vmatpush.bf16.msra.mxu3 %v2339_v35 }
  0xb7   :  { %v1148_v49 = vpop.f32.mrf.mxu0  ;;  %1657 = vmatpush.bf16.msra.mxu0 %v2719_v20 }
  0xb8   :  { %1398 = vmatpush.bf16.msra.mxu1 %v2231_v43  ;;  %v1162_v53 = vpop.f32.mrf.mxu1 }
  0xb9   :  { %1644 = vmatpush.bf16.msrb.mxu2 %v2710_v52  ;;  %v2731_v52 = vld [vmem:[#allocation8 + $0xb0] sm:$0xff] }
  0xba   :  { %1412 = vmatpush.bf16.msra.mxu3 %v2327_v44 }
  0xbb   :  { %1399 = vmatmul.bf16.vlgmr.msra.gmra.mxu1 %v3002_v37  ;;  %v1149_v37 = vadd.f32 %v1148_v49, %v310_v50  ;;  %1658 = vmatpush.bf16.msra.mxu0 %v2718_v26 }
  0xbc   :  { %1666 = vmatpush.bf16.msrb.mxu1 %v2732_v46 }
  0xbd   :  { %1413 = vmatmul.bf16.vlgmr.msra.gmra.mxu3 %v3004_v42  ;;  %1645 = vmatpush.bf16.msrb.mxu2 %v2709_v55  ;;  %v1163_v57 = vadd.f32 %v1162_v53, %v1149_v37 }
  0xbf   :  { %v1176_v51 = vpop.f32.mrf.mxu2  ;;  %v1150_v56 = vpop.f32.mrf.mxu0  ;;  %1659 = vmatpush.bf16.msra.mxu0 %v2717_v28 }
  0xc0   :  { %v1164_v58 = vpop.f32.mrf.mxu1  ;;  %v1190_v59 = vpop.f32.mrf.mxu3  ;;  %v1177_v60 = vadd.f32 %v1176_v51, %v1163_v57  ;;  %v1151_v61 = vadd.f32 %v1150_v56, %v310_v50  ;;  %1667 = vmatpush.bf16.msrb.mxu1 %v2731_v52 }
  0xc2   :  { %v1165_v63 = vadd.f32 %v1164_v58, %v1151_v61  ;;  %v1191_v0 = vadd.f32 %v1190_v59, %v1177_v60  ;;  %v2730_v58 = vld [vmem:[#allocation8 + $0xa8] sm:$0xff]  ;;  %v2729_v61 = vld [vmem:[#allocation8 + $0xa0] sm:$0xff] }
  0xc4   :  { %1668 = vmatpush.bf16.msrb.mxu1 %v2730_v58 }
  0xc7   :  { %v1178_v42 = vpop.f32.mrf.mxu2 }
  0xc8   :  { %v1179_v6 = vadd.f32 %v1178_v42, %v1165_v63  ;;  %v1192_v8 = vpop.f32.mrf.mxu3  ;;  %1669 = vmatpush.bf16.msrb.mxu1 %v2729_v61  ;;  %v2728_v63 = vld [vmem:[#allocation8 + $0x98] sm:$0xff] }
  0xca   :  { %v1193_v10 = vadd.f32 %v1192_v8, %v1179_v6 }
  0xcc   :  { %1670 = vmatpush.bf16.msrb.mxu1 %v2728_v63 }
  0xcf   :  { %v1232_v3 = vpop.f32.mrf.mxu2 }
  0xd7   :  { %v1204_v1 = vpop.f32.mrf.mxu0  ;;  %v1234_v17 = vpop.f32.mrf.mxu2 }
  0xd8   :  { %v1218_v4 = vpop.f32.mrf.mxu1  ;;  %v1205_v7 = vadd.f32 %v1204_v1, %v1191_v0  ;;  %v2727_v0 = vld [vmem:[#allocation8 + $0x90] sm:$0xff] }
  0xd9   :  { %1671 = vmatpush.bf16.msrb.mxu1 %v2727_v0 }
  0xda   :  { %v1219_v11 = vadd.f32 %v1218_v4, %v1205_v7  ;;  %v312_v7 = vperm.slane %v3024_v48, 2 }
  0xdc   :  { %v1233_v2 = vadd.f32 %v1232_v3, %v1219_v11  ;;  %v2726_v3 = vld [vmem:[#allocation8 + $0x88] sm:$0xff] }
  0xdd   :  { %1672 = vmatpush.bf16.msrb.mxu1 %v2726_v3 }
  0xde   :  { %v1433_v21 = vmax.f32 %v1233_v2, 0.0 }
  0xdf   :  { %v1206_v12 = vpop.f32.mrf.mxu0 }
  0xe0   :  { %v1207_v14 = vadd.f32 %v1206_v12, %v1193_v10  ;;  %v1220_v15 = vpop.f32.mrf.mxu1  ;;  %v1246_v24 = vpop.f32.mrf.mxu3 }
  0xe1   :  { %v1247_v30 = vadd.f32 %v1246_v24, %v311_v27  ;;  %1673 = vmatpush.bf16.msrb.mxu1 %v2725_v5 }
  0xe2   :  { %v1221_v13 = vadd.f32 %v1220_v15, %v1207_v14 }
  0xe3   :  { %v1260_v25 = vpop.f32.mrf.mxu2 }
  0xe4   :  { %v1235_v18 = vadd.f32 %v1234_v17, %v1221_v13  ;;  %v1261_v32 = vadd.f32 %v1260_v25, %v1247_v30 }
  0xe6   :  { %v1436_v22 = vmax.f32 %v1235_v18, 0.0 }
  0xe8   :  { %v1439_v23 = vpack.c.bf16 %v1436_v22, %v1433_v21  ;;  %v1248_v29 = vpop.f32.mrf.mxu3 }
  0xe9   :  { %v1249_v34 = vadd.f32 %v1248_v29, %v311_v27 }
  0xea   :  { %1646 = vmatmul.bf16.vlgmr.msrb.gmra.mxu2 %v1439_v23 }
  0xeb   :  { %v1262_v54 = vpop.f32.mrf.mxu2 }
  0xec   :  { %v1263_v39 = vadd.f32 %v1262_v54, %v1249_v34  ;;  %v2739_v34 = vld [vmem:[#allocation10 + $0x30] sm:$0xff] }
  0xf7   :  { %v1274_v31 = vpop.f32.mrf.mxu0 }
  0xf8   :  { %v1288_v33 = vpop.f32.mrf.mxu1  ;;  %v1275_v35 = vadd.f32 %v1274_v31, %v1261_v32 }
  0xfa   :  { %v1289_v41 = vadd.f32 %v1288_v33, %v1275_v35  ;;  %v2740_v33 = vld [vmem:[#allocation10 + $0x38] sm:$0xff]  ;;  %v2738_v35 = vld [vmem:[#allocation10 + $0x28] sm:$0xff] }
  0xfb   :  { %1751 = vmatpush.bf16.msrb.mxu3 %v2740_v33 }
  0xff   :  { %v1276_v38 = vpop.f32.mrf.mxu0  ;;  %1752 = vmatpush.bf16.msrb.mxu3 %v2739_v34 }
 0x100   :  { %v1302_v36 = vpop.f32.mrf.mxu3  ;;  %v1277_v43 = vadd.f32 %v1276_v38, %v1263_v39  ;;  %v1290_v44 = vpop.f32.mrf.mxu1  ;;  %v2736_v38 = vld [vmem:[#allocation10 + $0x18] sm:$0xff]  ;;  %v2735_v39 = vld [vmem:[#allocation10 + $0x10] sm:$0xff] }
 0x101   :  { %v1303_v45 = vadd.f32 %v1302_v36, %v1289_v41  ;;  %v2737_v36 = vld [vmem:[#allocation10 + $0x20] sm:$0xff] }
 0x102   :  { %v1291_v51 = vadd.f32 %v1290_v44, %v1277_v43  ;;  %v2733_v41 = vld [vmem:[#allocation10] sm:$0xff] }
 0x103   :  { %v1316_v40 = vpop.f32.mrf.mxu2  ;;  %1753 = vmatpush.bf16.msrb.mxu3 %v2738_v35 }
 0x104   :  { %v1317_v53 = vadd.f32 %v1316_v40, %v1303_v45  ;;  %v2734_v40 = vld [vmem:[#allocation10 + $0x8] sm:$0xff] }
 0x105   :  { %v2755_v45 = vld [vmem:[%s3042_s4] ss:$0 sm:$0xff]  ;;  %s2928_s4 = smov [#allocation11]  }
 0x107   :  { %v1330_v49 = vpop.f32.mrf.mxu0  ;;  %1754 = vmatpush.bf16.msrb.mxu3 %v2737_v36 }
 0x108   :  { %v1304_v47 = vpop.f32.mrf.mxu3  ;;  %v1331_v37 = vadd.f32 %v1330_v49, %v1317_v53 }
 0x109   :  { %v1305_v50 = vadd.f32 %v1304_v47, %v1291_v51 }
 0x10a   :  { %v1434_v59 = vmax.f32 %v1331_v37, 0.0 }
 0x10b   :  { %v1318_v55 = vpop.f32.mrf.mxu2  ;;  %1755 = vmatpush.bf16.msrb.mxu3 %v2736_v38 }
 0x10c   :  { %v1319_v56 = vadd.f32 %v1318_v55, %v1305_v50 }
 0x10f   :  { %v1332_v42 = vpop.f32.mrf.mxu0  ;;  %1756 = vmatpush.bf16.msrb.mxu3 %v2735_v39 }
 0x110   :  { %v1333_v57 = vadd.f32 %v1332_v42, %v1319_v56 }
 0x112   :  { %v1437_v60 = vmax.f32 %v1333_v57, 0.0 }
 0x113   :  { %1757 = vmatpush.bf16.msrb.mxu3 %v2734_v40 }
 0x114   :  { %v1440_v62 = vpack.c.bf16 %v1437_v60, %v1434_v59  ;;  %v2756_v59 = vld [vmem:[%s3044_s6] ss:$0 sm:$0xff]  ;;  %s1791_s6 = sshll.u32 %s2928_s4, 4  ;;  %s1792_s6 = int_to_ptr.vmem [resolvable:$true] %s1791_s6 }
 0x116   :  { %1660 = vmatmul.bf16.vlgmr.msra.gmra.mxu0 %v1440_v62 }
 0x117   :  { %1758 = vmatpush.bf16.msrb.mxu3 %v2733_v41 }
 0x118   :  { %v1344_v1 = vpop.f32.mrf.mxu1 }
 0x119   :  { %v1345_v9 = vadd.f32 %v1344_v1, %v312_v7 }
 0x11b   :  { %v1372_v4 = vpop.f32.mrf.mxu0 }
 0x120   :  { %v1358_v6 = vpop.f32.mrf.mxu3  ;;  %v1346_v8 = vpop.f32.mrf.mxu1 }
 0x121   :  { %v1359_v14 = vadd.f32 %v1358_v6, %v1345_v9  ;;  %v1347_v15 = vadd.f32 %v1346_v8, %v312_v7 }
 0x123   :  { %v1374_v10 = vpop.f32.mrf.mxu0  ;;  %v1386_v11 = vpop.f32.mrf.mxu2  ;;  %v1373_v17 = vadd.f32 %v1372_v4, %v1359_v14 }
 0x125   :  { %v1387_v19 = vadd.f32 %v1386_v11, %v1373_v17 }
 0x128   :  { %v1360_v12 = vpop.f32.mrf.mxu3 }
 0x129   :  { %v1361_v2 = vadd.f32 %v1360_v12, %v1347_v15 }
 0x12b   :  { %v1428_v13 = vpop.f32.mrf.mxu0  ;;  %v1375_v21 = vadd.f32 %v1374_v10, %v1361_v2  ;;  %v1388_v22 = vpop.f32.mrf.mxu2 }
 0x12d   :  { %v1389_v20 = vadd.f32 %v1388_v22, %v1375_v21 }
 0x133   :  { %v1430_v29 = vpop.f32.mrf.mxu0 }
 0x138   :  { %v1400_v16 = vpop.f32.mrf.mxu1 }
 0x139   :  { %v1401_v23 = vadd.f32 %v1400_v16, %v1387_v19 }
 0x140   :  { %v1414_v18 = vpop.f32.mrf.mxu3  ;;  %v1402_v24 = vpop.f32.mrf.mxu1 }
 0x141   :  { %v1415_v25 = vadd.f32 %v1414_v18, %v1401_v23  ;;  %v1403_v48 = vadd.f32 %v1402_v24, %v1389_v20 }
 0x143   :  { %v1429_v27 = vadd.f32 %v1428_v13, %v1415_v25 }
 0x145   :  { %v1435_v31 = vmax.f32 %v1429_v27, 0.0 }
 0x148   :  { %v1416_v26 = vpop.f32.mrf.mxu3 }
 0x149   :  { %v1417_v28 = vadd.f32 %v1416_v26, %v1403_v48 }
 0x14b   :  { %v1431_v30 = vadd.f32 %v1430_v29, %v1417_v28 }
 0x14d   :  { %v1438_v54 = vmax.f32 %v1431_v30, 0.0 }
 0x14f   :  { %v1441_v32 = vpack.c.bf16 %v1438_v54, %v1435_v31 }
 0x151   :  { %1674 = vmatmul.bf16.vlgmr.msrb.gmra.mxu1 %v1441_v32 }
 0x16d   :  { %v1647_v43 = vpop.f32.mrf.mxu2 }
 0x16e   :  { %v1648_v49 = vadd.f32 %v2755_v45, %v1647_v43 }
 0x175   :  { %v1649_v47 = vpop.f32.mrf.mxu2 }
 0x176   :  { %v1650_v52 = vadd.f32 %v2755_v45, %v1649_v47 }
 0x193   :  { %v1661_v44 = vpop.f32.mrf.mxu0 }
 0x194   :  { %v1662_v53 = vadd.f32 %v1661_v44, %v1648_v49 }
 0x19b   :  { %v1663_v51 = vpop.f32.mrf.mxu0 }
 0x19c   :  { %v1664_v50 = vadd.f32 %v1663_v51, %v1650_v52 }
 0x1ce   :  { %v1675_v46 = vpop.f32.mrf.mxu1 }
 0x1cf   :  { %v1676_v55 = vadd.f32 %v1675_v46, %v1662_v53 }
 0x1d1   :  { %v1680_v42 = vmax.f32 %v1676_v55, 0.0 }
 0x1d6   :  { %v1677_v37 = vpop.f32.mrf.mxu1 }
 0x1d7   :  { %v1678_v56 = vadd.f32 %v1677_v37, %v1664_v50 }
 0x1d9   :  { %v1681_v57 = vmax.f32 %v1678_v56, 0.0 }
 0x1db   :  { %v1682_v58 = vpack.c.bf16 %v1681_v57, %v1680_v42 }
 0x1dd   :  { %1759 = vmatmul.bf16.vlgmr.msrb.gmra.mxu3 %v1682_v58 }
 0x260   :  { %v1760_v60 = vpop.f32.mrf.mxu3 }
 0x261   :  { %v1761_v61 = vadd.f32 %v2756_v59, %v1760_v60 }
 0x263   :  { %1765 = vmax.xlane.f32.xlu0 %v1761_v61 }
 0x268   :  { %v1762_v62 = vpop.f32.mrf.mxu3 }
 0x269   :  { %v1763_v63 = vadd.f32 %v2756_v59, %v1762_v62 }
 0x26b   :  { %1767 = vmax.xlane.f32.xlu0 %v1763_v63 }
 0x2d6   :  { %v1766_v0 = vpop.xlane.xlu0 %1765 }
 0x2d7   :  { %v1769_v1 = vsub.f32 %v1761_v61, %v1766_v0 }
 0x2d9   :  { %v1771_v3 = vmul.f32 1.442695, %v1769_v1 }
 0x2db   :  { %2757 = vpow2.f32 %v1771_v3 }
 0x2de   :  { %v1768_v4 = vpop.xlane.xlu0 %1767 }
 0x2df   :  { %v1770_v5 = vsub.f32 %v1763_v63, %v1768_v4 }
 0x2e1   :  { %v2758_v6 = vpop.eup %2757  ;;  %v1773_v7 = vmul.f32 1.442695, %v1770_v5 }
 0x2e2   :  { %1775 = vadd.xlane.f32.xlu1 %v2758_v6 }
 0x2e3   :  { %2759 = vpow2.f32 %v1773_v7 }
 0x2e9   :  { %v2760_v8 = vpop.eup %2759 }
 0x2ea   :  { %1777 = vadd.xlane.f32.xlu1 %v2760_v8 }
 0x355   :  { %v1776_v9 = vpop.xlane.xlu1 %1775 }
 0x356   :  { %2761 = vlog2.f32 %v1776_v9 }
 0x35c   :  { %v2762_v10 = vpop.eup %2761 }
 0x35d   :  { %v1780_v11 = vmul.f32 0.6931472, %v2762_v10  ;;  %v1778_v12 = vpop.xlane.xlu1 %1777 }
 0x35e   :  { %2763 = vlog2.f32 %v1778_v12 }
 0x35f   :  { %v1783_v14 = vsub.f32 %v1769_v1, %v1780_v11 }
 0x361   :  { %1785 = vst [vmem:[#allocation11] sm:$0xff] %v1783_v14 }
 0x364   :  { %v2764_v15 = vpop.eup %2763 }
 0x365   :  { %v1782_v16 = vmul.f32 0.6931472, %v2764_v15 }
 0x367   :  { %v1784_v17 = vsub.f32 %v1770_v5, %v1782_v16 }
 0x369   :  { %1786 = vst [vmem:[#allocation11 + $0x8] sm:$0xff] %v1784_v17 }
 0x36a   :  { %1799 = dma.vmem_to_hbm [thread:$0]  %s1792_s6, 256, %s1794_s10, [#allocation4], %s2929_s11, %s2929_s11, %s2930_s12  }
 0x36b   :  { %2915 = dma.done.wait [#allocation4], 256  }
 0x36c   :  { %2916 = vsyncadd [#allocation4], 4294967040 }
 0x36d   :  { %1804 = vsyncpa [#allocation3], 1 }
 0x36e   :  { %1805 = vsyncpa [#allocation6], 1 }
 0x36f   :  { %1806 = vsyncpa [#allocation9], 1 }
 0x370   :  { %1807 = vsyncpa [#allocation4], 1 }

</bundles_post_ra>
